<compile_context>
chip_gen: v5e
topology: v5e:2x2
jax: 0.10.0
libtpu: 0.0.40
codegen_flags: <defaults>
</compile_context>

<pallas_src>
import functools

import jax
import jax.numpy as jnp
from jax.experimental import pallas as pl
from jax.experimental.pallas import tpu as pltpu


_VMEM_LIMIT_BYTES = 48 * 1024 * 1024   # v7x has 64 MiB VMEM/TC; leave headroom


def _choose_hw_tile(hw, tile_hw=None, target=512):
    """Pick an HW tile: a multiple of 128 that divides HW (or the full HW)."""
    if tile_hw is not None:
        assert hw % tile_hw == 0 and (tile_hw == hw or tile_hw % 128 == 0), (
            hw, tile_hw)
        return int(tile_hw)
    if hw % 128 != 0 or hw <= target:
        return int(hw)                  # single tile; full-extent block is OK
    t = target
    while t >= 128:
        if hw % t == 0:
            return int(t)
        t -= 128
    return int(hw)


def _y_blend(v, r, C, H, T):
    """Contract the y-interp weights: v (C*H, T) f32, r (H, T) f32 -> (C, T).

    Accumulated over H in sublane-sized chunks so only a (C, 8, T) product is
    live at a time (halves the largest temp vs the naive v*r + sum)."""
    v3 = v.reshape(C, H, T)
    hc = 8
    if H <= hc or H % hc != 0:
        return jnp.sum(v3 * r[None], axis=1)
    acc = jnp.zeros((C, T), jnp.float32)
    for h0 in range(0, H, hc):                       # static, fully unrolled
        acc = acc + jnp.sum(v3[:, h0:h0 + hc, :] * r[None, h0:h0 + hc, :],
                            axis=1)
    return acc


def _bilinear_warp_tile(x_chw, off, base, C, H, W):
    """Bilinear grid_sample (padding_mode='border', align_corners=True) for one
    image and one tile of output pixels.

      x_chw: (C*H, W)  image, matmul-ready (MXU contracts over W)
      off:   (2, T)    per-pixel (x, y) offsets for this tile
      base:  (2, T)    hoisted base (x, y) pixel coordinates for this tile
    returns (C, T) float32.
    """
    T = off.shape[-1]
    off_x = off[0:1].astype(jnp.float32)
    off_y = off[1:2].astype(jnp.float32)
    base_x = base[0:1]
    base_y = base[1:2]

    # normalized grid (clamped to [-2, 2]) -> un-normalized, border-clamped
    gx = jnp.clip(2.0 * (base_x + off_x) / (W - 1) - 1.0, -2.0, 2.0)
    gy = jnp.clip(2.0 * (base_y + off_y) / (H - 1) - 1.0, -2.0, 2.0)
    ix = jnp.clip((gx + 1.0) * (0.5 * (W - 1)), 0.0, W - 1.0)
    iy = jnp.clip((gy + 1.0) * (0.5 * (H - 1)), 0.0, H - 1.0)

    ix0f = jnp.floor(ix)
    iy0f = jnp.floor(iy)
    wx1 = ix - ix0f
    wy1 = iy - iy0f
    wx0 = 1.0 - wx1
    wy0 = 1.0 - wy1
    ix0 = ix0f.astype(jnp.int32)
    iy0 = iy0f.astype(jnp.int32)
    ix1 = jnp.minimum(ix0 + 1, W - 1)
    iy1 = jnp.minimum(iy0 + 1, H - 1)

    # Column one-hot with the x-interp weights baked in.  Exact when x is f32;
    # for bf16 x the MXU runs in bf16 (split into two 0/1 one-hot matmuls plus
    # a VPU blend if exact f32 interp weights are required with bf16 features).
    cdt = x_chw.dtype
    w_iota = jax.lax.broadcasted_iota(jnp.int32, (W, T), 0)
    sx = (jnp.where(w_iota == ix0, wx0, 0.0)
          + jnp.where(w_iota == ix1, wx1, 0.0)).astype(cdt)

    # x-interpolation on the MXU: (C*H, W) @ (W, T) -> (C*H, T) f32 accumulate.
    # TODO(synk): when H > W, feed x as (C*W, H) so the MXU contracts the longer
    # spatial axis (K=W underfills the 256-deep v6e/v7x MXU).
    v = jnp.dot(x_chw, sx, preferred_element_type=jnp.float32)

    # y-interpolation weights -> chunked VPU blend + H reduction.
    h_iota = jax.lax.broadcasted_iota(jnp.int32, (H, T), 0)
    r = (jnp.where(h_iota == iy0, wy0, 0.0)
         + jnp.where(h_iota == iy1, wy1, 0.0))
    return _y_blend(v, r, C, H, T)


# ----------------------------------------------------------------------------
# Kernel 1: warp (batch_map_offsets) + fused per-group max / mean reduction
# ----------------------------------------------------------------------------
def _warp_reduce_kernel(base_ref, x_ref, off_ref, o_ref, *, C, H, W, chuck):
    """base: (2,T)  x: (chuck, C*H, W)  off: (chuck, 2, T)  o: (1, 2C, T)."""
    base = base_ref[...]
    acc_max = None
    acc_sum = None
    for j in range(chuck):                         # chuck is small & static
        wj = _bilinear_warp_tile(x_ref[j], off_ref[j], base, C, H, W)
        if j == 0:
            acc_max, acc_sum = wj, wj
        else:
            acc_max = jnp.maximum(acc_max, wj)
            acc_sum = acc_sum + wj
    # two slice stores instead of a concatenate (no extra (2C, T) temp)
    o_ref[0, :C, :] = acc_max.astype(o_ref.dtype)
    o_ref[0, C:, :] = (acc_sum * (1.0 / chuck)).astype(o_ref.dtype)


def pallas_warp_share(x_flat, reg_in, base, chuck, C, H, W, tile_hw):
    """x_flat: (N, C*H, W), reg_in: (N, 2, HW), base: (2, HW)
       -> (G, 2C, HW) group-shared [max ; mean] of the warped features."""
    N = x_flat.shape[0]
    HW = H * W
    G = N // chuck
    T = tile_hw
    n_tiles = HW // T
    kernel = functools.partial(_warp_reduce_kernel, C=C, H=H, W=W, chuck=chuck)
    return pl.pallas_call(
        kernel,
        out_shape=jax.ShapeDtypeStruct((G, 2 * C, HW), x_flat.dtype),
        grid=(G, n_tiles),
        in_specs=[
            # hoisted base coordinates: depend only on the HW tile
            pl.BlockSpec((2, T), lambda g, t: (0, t)),
            # whole chuck group, indexed by group only -> resident across tiles
            pl.BlockSpec((chuck, C * H, W), lambda g, t: (g, 0, 0)),
            pl.BlockSpec((chuck, 2, T), lambda g, t: (g, 0, t)),
        ],
        out_specs=pl.BlockSpec((1, 2 * C, T), lambda g, t: (g, 0, t)),
        compiler_params=pltpu.CompilerParams(
            dimension_semantics=("parallel", "parallel"),
            vmem_limit_bytes=_VMEM_LIMIT_BYTES),
    )(base, x_flat, reg_in)


# ----------------------------------------------------------------------------
# Kernel 2: broadcast shared group features to every member + inverse warp
# ----------------------------------------------------------------------------
def _dewarp_kernel(base_ref, xs_ref, off_ref, o_ref, *, C2, H, W):
    """base: (2,T)  xs: (1, C2*H, W)  off: (1, 2, T)  o: (1, C2, T)."""
    o_ref[0] = _bilinear_warp_tile(xs_ref[0], off_ref[0], base_ref[...],
                                   C2, H, W).astype(o_ref.dtype)


def pallas_dewarp(xs_flat, reg_out, base, chuck, H, W, tile_hw):
    """xs_flat: (G, C2*H, W), reg_out: (N, 2, HW), base: (2, HW) -> (N, C2, HW)."""
    G = xs_flat.shape[0]
    C2 = xs_flat.shape[1] // H
    N = reg_out.shape[0]
    HW = H * W
    T = tile_hw
    n_tiles = HW // T
    kernel = functools.partial(_dewarp_kernel, C2=C2, H=H, W=W)
    return pl.pallas_call(
        kernel,
        out_shape=jax.ShapeDtypeStruct((N, C2, HW), xs_flat.dtype),
        grid=(G, n_tiles, chuck),
        in_specs=[
            pl.BlockSpec((2, T), lambda g, t, j: (0, t)),
            # shared features indexed by group only: DMA'd once per group,
            # already matmul-ready ((G, 2C*H, W) is a free HBM view)
            pl.BlockSpec((1, C2 * H, W), lambda g, t, j: (g, 0, 0)),
            pl.BlockSpec((1, 2, T), lambda g, t, j: (g * chuck + j, 0, t)),
        ],
        out_specs=pl.BlockSpec((1, C2, T),
                               lambda g, t, j: (g * chuck + j, 0, t)),
        compiler_params=pltpu.CompilerParams(
            dimension_semantics=("parallel", "parallel", "arbitrary"),
            vmem_limit_bytes=_VMEM_LIMIT_BYTES),
    )(base, xs_flat, reg_out)


# ----------------------------------------------------------------------------
# ShareLayer forward (no trainable parameters in the module)
# ----------------------------------------------------------------------------
def share_layer_forward(x, reg, chuck, tile_hw=None):
    """x: (N, C, H, W), reg: (N, 4, H, W) -> (N, 2C, H, W)."""
    N, C, H, W = x.shape
    assert H > 1 and W > 1, "bilinear grid_sample needs H, W > 1"
    assert N % chuck == 0, (N, chuck)
    HW = H * W
    G = N // chuck
    T = _choose_hw_tile(HW, tile_hw)

    x_flat = x.reshape(N, C * H, W)          # free row-major view
    reg_flat = reg.reshape(N, 4, HW)
    reg_in = reg_flat[:, 0:2]                # warp offsets
    reg_out = reg_flat[:, 2:4]               # un-warp offsets

    # Grid-invariant base pixel coordinates, hoisted out of both kernels.
    p = jnp.arange(HW, dtype=jnp.int32)
    base = jnp.stack([(p % W).astype(jnp.float32),
                      (p // W).astype(jnp.float32)], axis=0)       # (2, HW)

    x_share = pallas_warp_share(x_flat, reg_in, base, chuck, C, H, W, T)
    xs_flat = x_share.reshape(G, 2 * C * H, W)     # free row-major view
    out = pallas_dewarp(xs_flat, reg_out, base, chuck, H, W, T)    # (N, 2C, HW)
    return out.reshape(N, 2 * C, H, W)


# ----------------------------------------------------------------------------
# Pure-JAX reference (for correctness check only)
# ----------------------------------------------------------------------------
def _grid_sample_ref(x, offsets):
    N, C, H, W = x.shape
    base_y = jnp.broadcast_to(jnp.arange(H, dtype=jnp.float32)[:, None], (H, W))
    base_x = jnp.broadcast_to(jnp.arange(W, dtype=jnp.float32)[None, :], (H, W))
    gx = jnp.clip(2.0 * (base_x[None] + offsets[:, 0]) / (W - 1) - 1.0, -2.0, 2.0)
    gy = jnp.clip(2.0 * (base_y[None] + offsets[:, 1]) / (H - 1) - 1.0, -2.0, 2.0)
    ix = jnp.clip((gx + 1.0) * 0.5 * (W - 1), 0.0, W - 1.0)
    iy = jnp.clip((gy + 1.0) * 0.5 * (H - 1), 0.0, H - 1.0)
    ix0f = jnp.floor(ix); iy0f = jnp.floor(iy)
    wx1 = ix - ix0f; wy1 = iy - iy0f
    ix0 = ix0f.astype(jnp.int32); iy0 = iy0f.astype(jnp.int32)
    ix1 = jnp.minimum(ix0 + 1, W - 1); iy1 = jnp.minimum(iy0 + 1, H - 1)
    flat = x.reshape(N, C, H * W)

    def gather(iy_, ix_):
        idx = (iy_ * W + ix_).reshape(N, 1, H * W)
        idx = jnp.broadcast_to(idx, (N, C, H * W))
        return jnp.take_along_axis(flat, idx, axis=2).reshape(N, C, H, W)

    w00 = ((1 - wy1) * (1 - wx1))[:, None]
    w01 = ((1 - wy1) * wx1)[:, None]
    w10 = (wy1 * (1 - wx1))[:, None]
    w11 = (wy1 * wx1)[:, None]
    return (w00 * gather(iy0, ix0) + w01 * gather(iy0, ix1) +
            w10 * gather(iy1, ix0) + w11 * gather(iy1, ix1))


def share_layer_ref(x, reg, chuck):
    reg_in, reg_out = jnp.split(reg, 2, axis=1)
    x_reg = _grid_sample_ref(x, reg_in)
    N, C, H, W = x_reg.shape
    xg = x_reg.reshape(N // chuck, chuck, C, H, W)
    x_share = jnp.concatenate([jnp.max(xg, axis=1), jnp.mean(xg, axis=1)], axis=1)
    x_share = jnp.repeat(x_share, chuck, axis=0)
    return _grid_sample_ref(x_share, reg_out)


if __name__ == "__main__":
    key = jax.random.PRNGKey(0)
    chuck = 2
    N, C, H, W = 4, 4, 16, 16                  # N must be a multiple of chuck
    kx, kr = jax.random.split(key)
    x = jax.random.normal(kx, (N, C, H, W), dtype=jnp.float32)
    reg = jax.random.normal(kr, (N, 4, H, W), dtype=jnp.float32) * 3.0

    fwd = jax.jit(share_layer_forward, static_argnames=("chuck", "tile_hw"))
    # tile_hw=128 -> 2 HW tiles at this size, exercising the tiled path.
    out = fwd(x, reg, chuck=chuck, tile_hw=128)
    jax.block_until_ready(out)

    assert out.shape == (N, 2 * C, H, W), out.shape
    ref = share_layer_ref(x, reg, chuck)
    assert jnp.allclose(out, ref, atol=1e-4, rtol=1e-4), (
        float(jnp.max(jnp.abs(out - ref))))
    print("KERNEL_OK")
</pallas_src>

<mosaic_0001>
module attributes {stable_mosaic.version = 11 : i64} {
  func.func @_dewarp_kernel(%arg0: i32, %arg1: i32, %arg2: i32, %arg3: memref<2x128xf32, #tpu.memory_space<vmem>>, %arg4: memref<1x128x16xf32, #tpu.memory_space<vmem>>, %arg5: memref<1x2x128xf32, #tpu.memory_space<vmem>>, %arg6: memref<1x8x128xf32, #tpu.memory_space<vmem>>) attributes {dimension_semantics = [#tpu.dimension_semantics<parallel>, #tpu.dimension_semantics<parallel>, #tpu.dimension_semantics<arbitrary>], iteration_bounds = array<i64: 2, 2, 2>, scalar_prefetch = 0 : i64, scratch_operands = 0 : i64, tpu.core_type = #tpu.core_type<tc>, window_params = [{transform_indices = @transform_0, window_bounds = array<i64: 2, 128>}, {transform_indices = @transform_1, window_bounds = array<i64: 1, 128, 16>}, {transform_indices = @transform_2, window_bounds = array<i64: 1, 2, 128>}, {transform_indices = @transform_3, window_bounds = array<i64: 1, 8, 128>}]} {
    %c0 = arith.constant 0 : index
    %c0_0 = arith.constant 0 : index
    %c0_1 = arith.constant 0 : index
    %0 = vector.load %arg4[%c0, %c0_0, %c0_1] : memref<1x128x16xf32, #tpu.memory_space<vmem>>, vector<1x128x16xf32>
    %1 = vector.shape_cast %0 : vector<1x128x16xf32> to vector<128x16xf32>
    %c0_2 = arith.constant 0 : index
    %c0_3 = arith.constant 0 : index
    %c0_4 = arith.constant 0 : index
    %2 = vector.load %arg5[%c0_2, %c0_3, %c0_4] : memref<1x2x128xf32, #tpu.memory_space<vmem>>, vector<1x2x128xf32>
    %3 = vector.shape_cast %2 : vector<1x2x128xf32> to vector<2x128xf32>
    %c0_5 = arith.constant 0 : index
    %c0_6 = arith.constant 0 : index
    %4 = vector.load %arg3[%c0_5, %c0_6] : memref<2x128xf32, #tpu.memory_space<vmem>>, vector<2x128xf32>
    %5 = vector.extract_strided_slice %3 {offsets = [0, 0], sizes = [1, 128], strides = [1, 1]} : vector<2x128xf32> to vector<1x128xf32>
    %6 = vector.extract_strided_slice %3 {offsets = [1, 0], sizes = [1, 128], strides = [1, 1]} : vector<2x128xf32> to vector<1x128xf32>
    %7 = vector.extract_strided_slice %4 {offsets = [0, 0], sizes = [1, 128], strides = [1, 1]} : vector<2x128xf32> to vector<1x128xf32>
    %8 = vector.extract_strided_slice %4 {offsets = [1, 0], sizes = [1, 128], strides = [1, 1]} : vector<2x128xf32> to vector<1x128xf32>
    %9 = arith.addf %7, %5 : vector<1x128xf32>
    %cst = arith.constant 2.000000e+00 : f32
    %10 = vector.broadcast %cst : f32 to vector<1x128xf32>
    %11 = arith.mulf %10, %9 : vector<1x128xf32>
    %cst_7 = arith.constant 1.500000e+01 : f32
    %12 = vector.broadcast %cst_7 : f32 to vector<1x128xf32>
    %13 = arith.divf %11, %12 : vector<1x128xf32>
    %cst_8 = arith.constant 1.000000e+00 : f32
    %14 = vector.broadcast %cst_8 : f32 to vector<1x128xf32>
    %15 = arith.subf %13, %14 : vector<1x128xf32>
    %cst_9 = arith.constant -2.000000e+00 : f32
    %cst_10 = arith.constant 2.000000e+00 : f32
    %16 = vector.broadcast %cst_9 : f32 to vector<1x128xf32>
    %17 = arith.maximumf %16, %15 : vector<1x128xf32>
    %18 = vector.broadcast %cst_10 : f32 to vector<1x128xf32>
    %19 = arith.minimumf %18, %17 : vector<1x128xf32>
    %20 = arith.addf %8, %6 : vector<1x128xf32>
    %cst_11 = arith.constant 2.000000e+00 : f32
    %21 = vector.broadcast %cst_11 : f32 to vector<1x128xf32>
    %22 = arith.mulf %21, %20 : vector<1x128xf32>
    %cst_12 = arith.constant 1.500000e+01 : f32
    %23 = vector.broadcast %cst_12 : f32 to vector<1x128xf32>
    %24 = arith.divf %22, %23 : vector<1x128xf32>
    %cst_13 = arith.constant 1.000000e+00 : f32
    %25 = vector.broadcast %cst_13 : f32 to vector<1x128xf32>
    %26 = arith.subf %24, %25 : vector<1x128xf32>
    %cst_14 = arith.constant -2.000000e+00 : f32
    %cst_15 = arith.constant 2.000000e+00 : f32
    %27 = vector.broadcast %cst_14 : f32 to vector<1x128xf32>
    %28 = arith.maximumf %27, %26 : vector<1x128xf32>
    %29 = vector.broadcast %cst_15 : f32 to vector<1x128xf32>
    %30 = arith.minimumf %29, %28 : vector<1x128xf32>
    %cst_16 = arith.constant 1.000000e+00 : f32
    %31 = vector.broadcast %cst_16 : f32 to vector<1x128xf32>
    %32 = arith.addf %19, %31 : vector<1x128xf32>
    %cst_17 = arith.constant 7.500000e+00 : f32
    %33 = vector.broadcast %cst_17 : f32 to vector<1x128xf32>
    %34 = arith.mulf %32, %33 : vector<1x128xf32>
    %cst_18 = arith.constant 0.000000e+00 : f32
    %cst_19 = arith.constant 1.500000e+01 : f32
    %35 = vector.broadcast %cst_18 : f32 to vector<1x128xf32>
    %36 = arith.maximumf %35, %34 : vector<1x128xf32>
    %37 = vector.broadcast %cst_19 : f32 to vector<1x128xf32>
    %38 = arith.minimumf %37, %36 : vector<1x128xf32>
    %cst_20 = arith.constant 1.000000e+00 : f32
    %39 = vector.broadcast %cst_20 : f32 to vector<1x128xf32>
    %40 = arith.addf %30, %39 : vector<1x128xf32>
    %cst_21 = arith.constant 7.500000e+00 : f32
    %41 = vector.broadcast %cst_21 : f32 to vector<1x128xf32>
    %42 = arith.mulf %40, %41 : vector<1x128xf32>
    %cst_22 = arith.constant 0.000000e+00 : f32
    %cst_23 = arith.constant 1.500000e+01 : f32
    %43 = vector.broadcast %cst_22 : f32 to vector<1x128xf32>
    %44 = arith.maximumf %43, %42 : vector<1x128xf32>
    %45 = vector.broadcast %cst_23 : f32 to vector<1x128xf32>
    %46 = arith.minimumf %45, %44 : vector<1x128xf32>
    %47 = math.floor %38 : vector<1x128xf32>
    %48 = math.floor %46 : vector<1x128xf32>
    %49 = arith.subf %38, %47 : vector<1x128xf32>
    %50 = arith.subf %46, %48 : vector<1x128xf32>
    %cst_24 = arith.constant 1.000000e+00 : f32
    %51 = vector.broadcast %cst_24 : f32 to vector<1x128xf32>
    %52 = arith.subf %51, %49 : vector<1x128xf32>
    %cst_25 = arith.constant 1.000000e+00 : f32
    %53 = vector.broadcast %cst_25 : f32 to vector<1x128xf32>
    %54 = arith.subf %53, %50 : vector<1x128xf32>
    %55 = arith.fptosi %47 : vector<1x128xf32> to vector<1x128xi32>
    %56 = arith.fptosi %48 : vector<1x128xf32> to vector<1x128xi32>
    %c1_i32 = arith.constant 1 : i32
    %57 = vector.broadcast %c1_i32 : i32 to vector<1x128xi32>
    %58 = arith.addi %55, %57 : vector<1x128xi32>
    %c15_i32 = arith.constant 15 : i32
    %59 = vector.broadcast %c15_i32 : i32 to vector<1x128xi32>
    %60 = arith.minsi %58, %59 : vector<1x128xi32>
    %c1_i32_26 = arith.constant 1 : i32
    %61 = vector.broadcast %c1_i32_26 : i32 to vector<1x128xi32>
    %62 = arith.addi %56, %61 : vector<1x128xi32>
    %c15_i32_27 = arith.constant 15 : i32
    %63 = vector.broadcast %c15_i32_27 : i32 to vector<1x128xi32>
    %64 = arith.minsi %62, %63 : vector<1x128xi32>
    %65 = tpu.iota {dimensions = array<i32: 0>} : vector<16x128xi32>
    %66 = vector.broadcast %55 : vector<1x128xi32> to vector<16x128xi32>
    %67 = arith.cmpi eq, %65, %66 : vector<16x128xi32>
    %cst_28 = arith.constant 0.000000e+00 : f32
    %68 = vector.shape_cast %52 : vector<1x128xf32> to vector<1x128xf32>
    %69 = vector.broadcast %68 : vector<1x128xf32> to vector<16x128xf32>
    %70 = vector.broadcast %cst_28 : f32 to vector<16x128xf32>
    %71 = arith.select %67, %69, %70 : vector<16x128xi1>, vector<16x128xf32>
    %72 = vector.broadcast %60 : vector<1x128xi32> to vector<16x128xi32>
    %73 = arith.cmpi eq, %65, %72 : vector<16x128xi32>
    %cst_29 = arith.constant 0.000000e+00 : f32
    %74 = vector.shape_cast %49 : vector<1x128xf32> to vector<1x128xf32>
    %75 = vector.broadcast %74 : vector<1x128xf32> to vector<16x128xf32>
    %76 = vector.broadcast %cst_29 : f32 to vector<16x128xf32>
    %77 = arith.select %73, %75, %76 : vector<16x128xi1>, vector<16x128xf32>
    %78 = arith.addf %71, %77 : vector<16x128xf32>
    %cst_30 = arith.constant dense<0.000000e+00> : vector<128x128xf32>
    %79 = tpu.matmul %1, %78, %cst_30 {dimension_numbers = #tpu.dot_dimension_numbers<[1], [0], [0], [1], [0, 0, 1, 1], [], []>} : vector<128x16xf32>, vector<16x128xf32>, vector<128x128xf32> -> vector<128x128xf32>
    %80 = tpu.iota {dimensions = array<i32: 0>} : vector<16x128xi32>
    %81 = vector.broadcast %56 : vector<1x128xi32> to vector<16x128xi32>
    %82 = arith.cmpi eq, %80, %81 : vector<16x128xi32>
    %cst_31 = arith.constant 0.000000e+00 : f32
    %83 = vector.shape_cast %54 : vector<1x128xf32> to vector<1x128xf32>
    %84 = vector.broadcast %83 : vector<1x128xf32> to vector<16x128xf32>
    %85 = vector.broadcast %cst_31 : f32 to vector<16x128xf32>
    %86 = arith.select %82, %84, %85 : vector<16x128xi1>, vector<16x128xf32>
    %87 = vector.broadcast %64 : vector<1x128xi32> to vector<16x128xi32>
    %88 = arith.cmpi eq, %80, %87 : vector<16x128xi32>
    %cst_32 = arith.constant 0.000000e+00 : f32
    %89 = vector.shape_cast %50 : vector<1x128xf32> to vector<1x128xf32>
    %90 = vector.broadcast %89 : vector<1x128xf32> to vector<16x128xf32>
    %91 = vector.broadcast %cst_32 : f32 to vector<16x128xf32>
    %92 = arith.select %88, %90, %91 : vector<16x128xi1>, vector<16x128xf32>
    %93 = arith.addf %86, %92 : vector<16x128xf32>
    %94 = vector.shape_cast %79 : vector<128x128xf32> to vector<8x16x128xf32>
    %cst_33 = arith.constant 0.000000e+00 : f32
    %95 = vector.broadcast %cst_33 : f32 to vector<8x128xf32>
    %96 = vector.extract_strided_slice %94 {offsets = [0, 0, 0], sizes = [8, 8, 128], strides = [1, 1, 1]} : vector<8x16x128xf32> to vector<8x8x128xf32>
    %97 = vector.extract_strided_slice %93 {offsets = [0, 0], sizes = [8, 128], strides = [1, 1]} : vector<16x128xf32> to vector<8x128xf32>
    %98 = vector.shape_cast %97 : vector<8x128xf32> to vector<1x8x128xf32>
    %99 = vector.broadcast %98 : vector<1x8x128xf32> to vector<8x8x128xf32>
    %100 = arith.mulf %96, %99 : vector<8x8x128xf32>
    %cst_34 = arith.constant dense<0.000000e+00> : vector<8x128xf32>
    %101 = vector.multi_reduction <add>, %100, %cst_34 [1] : vector<8x8x128xf32> to vector<8x128xf32>
    %102 = arith.addf %95, %101 : vector<8x128xf32>
    %103 = vector.extract_strided_slice %94 {offsets = [0, 8, 0], sizes = [8, 8, 128], strides = [1, 1, 1]} : vector<8x16x128xf32> to vector<8x8x128xf32>
    %104 = vector.extract_strided_slice %93 {offsets = [8, 0], sizes = [8, 128], strides = [1, 1]} : vector<16x128xf32> to vector<8x128xf32>
    %105 = vector.shape_cast %104 : vector<8x128xf32> to vector<1x8x128xf32>
    %106 = vector.broadcast %105 : vector<1x8x128xf32> to vector<8x8x128xf32>
    %107 = arith.mulf %103, %106 : vector<8x8x128xf32>
    %cst_35 = arith.constant dense<0.000000e+00> : vector<8x128xf32>
    %108 = vector.multi_reduction <add>, %107, %cst_35 [1] : vector<8x8x128xf32> to vector<8x128xf32>
    %109 = arith.addf %102, %108 : vector<8x128xf32>
    %c0_36 = arith.constant 0 : index
    %c0_37 = arith.constant 0 : index
    %c0_38 = arith.constant 0 : index
    %110 = vector.load %arg6[%c0_36, %c0_37, %c0_38] : memref<1x8x128xf32, #tpu.memory_space<vmem>>, vector<1x8x128xf32>
    %111 = vector.shape_cast %110 : vector<1x8x128xf32> to vector<8x128xf32>
    %112 = vector.shape_cast %109 : vector<8x128xf32> to vector<1x8x128xf32>
    tpu.vector_store %arg6[%c0_36, %c0_37, %c0_38], %112 {strides = array<i32>} : memref<1x8x128xf32, #tpu.memory_space<vmem>>, vector<1x8x128xf32>,
    return
  }
  func.func @transform_0(%arg0: i32, %arg1: i32, %arg2: i32) -> (i32, i32) {
    %c0_i32 = arith.constant 0 : i32
    %c0_i32_0 = arith.constant 0 : i32
    return %c0_i32, %arg1 : i32, i32
  }
  func.func @transform_1(%arg0: i32, %arg1: i32, %arg2: i32) -> (i32, i32, i32) {
    %c0_i32 = arith.constant 0 : i32
    %c0_i32_0 = arith.constant 0 : i32
    %c0_i32_1 = arith.constant 0 : i32
    return %arg0, %c0_i32, %c0_i32_0 : i32, i32, i32
  }
  func.func @transform_2(%arg0: i32, %arg1: i32, %arg2: i32) -> (i32, i32, i32) {
    %c2_i32 = arith.constant 2 : i32
    %0 = arith.muli %arg0, %c2_i32 : i32
    %1 = arith.addi %0, %arg2 : i32
    %c0_i32 = arith.constant 0 : i32
    %c0_i32_0 = arith.constant 0 : i32
    return %1, %c0_i32, %arg1 : i32, i32, i32
  }
  func.func @transform_3(%arg0: i32, %arg1: i32, %arg2: i32) -> (i32, i32, i32) {
    %c2_i32 = arith.constant 2 : i32
    %0 = arith.muli %arg0, %c2_i32 : i32
    %1 = arith.addi %0, %arg2 : i32
    %c0_i32 = arith.constant 0 : i32
    %c0_i32_0 = arith.constant 0 : i32
    return %1, %c0_i32, %arg1 : i32, i32, i32
  }
}

module attributes {stable_mosaic.version = 11 : i64} {
  func.func @_warp_reduce_kernel(%arg0: i32, %arg1: i32, %arg2: memref<2x128xf32, #tpu.memory_space<vmem>>, %arg3: memref<2x64x16xf32, #tpu.memory_space<vmem>>, %arg4: memref<2x2x128xf32, #tpu.memory_space<vmem>>, %arg5: memref<1x8x128xf32, #tpu.memory_space<vmem>>) attributes {dimension_semantics = [#tpu.dimension_semantics<parallel>, #tpu.dimension_semantics<parallel>], iteration_bounds = array<i64: 2, 2>, scalar_prefetch = 0 : i64, scratch_operands = 0 : i64, tpu.core_type = #tpu.core_type<tc>, window_params = [{transform_indices = @transform_0, window_bounds = array<i64: 2, 128>}, {transform_indices = @transform_1, window_bounds = array<i64: 2, 64, 16>}, {transform_indices = @transform_2, window_bounds = array<i64: 2, 2, 128>}, {transform_indices = @transform_3, window_bounds = array<i64: 1, 8, 128>}]} {
    %c0 = arith.constant 0 : index
    %c0_0 = arith.constant 0 : index
    %0 = vector.load %arg2[%c0, %c0_0] : memref<2x128xf32, #tpu.memory_space<vmem>>, vector<2x128xf32>
    %c0_1 = arith.constant 0 : index
    %c0_2 = arith.constant 0 : index
    %c0_3 = arith.constant 0 : index
    %1 = vector.load %arg3[%c0_1, %c0_2, %c0_3] : memref<2x64x16xf32, #tpu.memory_space<vmem>>, vector<1x64x16xf32>
    %2 = vector.shape_cast %1 : vector<1x64x16xf32> to vector<64x16xf32>
    %c0_4 = arith.constant 0 : index
    %c0_5 = arith.constant 0 : index
    %c0_6 = arith.constant 0 : index
    %3 = vector.load %arg4[%c0_4, %c0_5, %c0_6] : memref<2x2x128xf32, #tpu.memory_space<vmem>>, vector<1x2x128xf32>
    %4 = vector.shape_cast %3 : vector<1x2x128xf32> to vector<2x128xf32>
    %5 = vector.extract_strided_slice %4 {offsets = [0, 0], sizes = [1, 128], strides = [1, 1]} : vector<2x128xf32> to vector<1x128xf32>
    %6 = vector.extract_strided_slice %4 {offsets = [1, 0], sizes = [1, 128], strides = [1, 1]} : vector<2x128xf32> to vector<1x128xf32>
    %7 = vector.extract_strided_slice %0 {offsets = [0, 0], sizes = [1, 128], strides = [1, 1]} : vector<2x128xf32> to vector<1x128xf32>
    %8 = vector.extract_strided_slice %0 {offsets = [1, 0], sizes = [1, 128], strides = [1, 1]} : vector<2x128xf32> to vector<1x128xf32>
    %9 = arith.addf %7, %5 : vector<1x128xf32>
    %cst = arith.constant 2.000000e+00 : f32
    %10 = vector.broadcast %cst : f32 to vector<1x128xf32>
    %11 = arith.mulf %10, %9 : vector<1x128xf32>
    %cst_7 = arith.constant 1.500000e+01 : f32
    %12 = vector.broadcast %cst_7 : f32 to vector<1x128xf32>
    %13 = arith.divf %11, %12 : vector<1x128xf32>
    %cst_8 = arith.constant 1.000000e+00 : f32
    %14 = vector.broadcast %cst_8 : f32 to vector<1x128xf32>
    %15 = arith.subf %13, %14 : vector<1x128xf32>
    %cst_9 = arith.constant -2.000000e+00 : f32
    %cst_10 = arith.constant 2.000000e+00 : f32
    %16 = vector.broadcast %cst_9 : f32 to vector<1x128xf32>
    %17 = arith.maximumf %16, %15 : vector<1x128xf32>
    %18 = vector.broadcast %cst_10 : f32 to vector<1x128xf32>
    %19 = arith.minimumf %18, %17 : vector<1x128xf32>
    %20 = arith.addf %8, %6 : vector<1x128xf32>
    %cst_11 = arith.constant 2.000000e+00 : f32
    %21 = vector.broadcast %cst_11 : f32 to vector<1x128xf32>
    %22 = arith.mulf %21, %20 : vector<1x128xf32>
    %cst_12 = arith.constant 1.500000e+01 : f32
    %23 = vector.broadcast %cst_12 : f32 to vector<1x128xf32>
    %24 = arith.divf %22, %23 : vector<1x128xf32>
    %cst_13 = arith.constant 1.000000e+00 : f32
    %25 = vector.broadcast %cst_13 : f32 to vector<1x128xf32>
    %26 = arith.subf %24, %25 : vector<1x128xf32>
    %cst_14 = arith.constant -2.000000e+00 : f32
    %cst_15 = arith.constant 2.000000e+00 : f32
    %27 = vector.broadcast %cst_14 : f32 to vector<1x128xf32>
    %28 = arith.maximumf %27, %26 : vector<1x128xf32>
    %29 = vector.broadcast %cst_15 : f32 to vector<1x128xf32>
    %30 = arith.minimumf %29, %28 : vector<1x128xf32>
    %cst_16 = arith.constant 1.000000e+00 : f32
    %31 = vector.broadcast %cst_16 : f32 to vector<1x128xf32>
    %32 = arith.addf %19, %31 : vector<1x128xf32>
    %cst_17 = arith.constant 7.500000e+00 : f32
    %33 = vector.broadcast %cst_17 : f32 to vector<1x128xf32>
    %34 = arith.mulf %32, %33 : vector<1x128xf32>
    %cst_18 = arith.constant 0.000000e+00 : f32
    %cst_19 = arith.constant 1.500000e+01 : f32
    %35 = vector.broadcast %cst_18 : f32 to vector<1x128xf32>
    %36 = arith.maximumf %35, %34 : vector<1x128xf32>
    %37 = vector.broadcast %cst_19 : f32 to vector<1x128xf32>
    %38 = arith.minimumf %37, %36 : vector<1x128xf32>
    %cst_20 = arith.constant 1.000000e+00 : f32
    %39 = vector.broadcast %cst_20 : f32 to vector<1x128xf32>
    %40 = arith.addf %30, %39 : vector<1x128xf32>
    %cst_21 = arith.constant 7.500000e+00 : f32
    %41 = vector.broadcast %cst_21 : f32 to vector<1x128xf32>
    %42 = arith.mulf %40, %41 : vector<1x128xf32>
    %cst_22 = arith.constant 0.000000e+00 : f32
    %cst_23 = arith.constant 1.500000e+01 : f32
    %43 = vector.broadcast %cst_22 : f32 to vector<1x128xf32>
    %44 = arith.maximumf %43, %42 : vector<1x128xf32>
    %45 = vector.broadcast %cst_23 : f32 to vector<1x128xf32>
    %46 = arith.minimumf %45, %44 : vector<1x128xf32>
    %47 = math.floor %38 : vector<1x128xf32>
    %48 = math.floor %46 : vector<1x128xf32>
    %49 = arith.subf %38, %47 : vector<1x128xf32>
    %50 = arith.subf %46, %48 : vector<1x128xf32>
    %cst_24 = arith.constant 1.000000e+00 : f32
    %51 = vector.broadcast %cst_24 : f32 to vector<1x128xf32>
    %52 = arith.subf %51, %49 : vector<1x128xf32>
    %cst_25 = arith.constant 1.000000e+00 : f32
    %53 = vector.broadcast %cst_25 : f32 to vector<1x128xf32>
    %54 = arith.subf %53, %50 : vector<1x128xf32>
    %55 = arith.fptosi %47 : vector<1x128xf32> to vector<1x128xi32>
    %56 = arith.fptosi %48 : vector<1x128xf32> to vector<1x128xi32>
    %c1_i32 = arith.constant 1 : i32
    %57 = vector.broadcast %c1_i32 : i32 to vector<1x128xi32>
    %58 = arith.addi %55, %57 : vector<1x128xi32>
    %c15_i32 = arith.constant 15 : i32
    %59 = vector.broadcast %c15_i32 : i32 to vector<1x128xi32>
    %60 = arith.minsi %58, %59 : vector<1x128xi32>
    %c1_i32_26 = arith.constant 1 : i32
    %61 = vector.broadcast %c1_i32_26 : i32 to vector<1x128xi32>
    %62 = arith.addi %56, %61 : vector<1x128xi32>
    %c15_i32_27 = arith.constant 15 : i32
    %63 = vector.broadcast %c15_i32_27 : i32 to vector<1x128xi32>
    %64 = arith.minsi %62, %63 : vector<1x128xi32>
    %65 = tpu.iota {dimensions = array<i32: 0>} : vector<16x128xi32>
    %66 = vector.broadcast %55 : vector<1x128xi32> to vector<16x128xi32>
    %67 = arith.cmpi eq, %65, %66 : vector<16x128xi32>
    %cst_28 = arith.constant 0.000000e+00 : f32
    %68 = vector.shape_cast %52 : vector<1x128xf32> to vector<1x128xf32>
    %69 = vector.broadcast %68 : vector<1x128xf32> to vector<16x128xf32>
    %70 = vector.broadcast %cst_28 : f32 to vector<16x128xf32>
    %71 = arith.select %67, %69, %70 : vector<16x128xi1>, vector<16x128xf32>
    %72 = vector.broadcast %60 : vector<1x128xi32> to vector<16x128xi32>
    %73 = arith.cmpi eq, %65, %72 : vector<16x128xi32>
    %cst_29 = arith.constant 0.000000e+00 : f32
    %74 = vector.shape_cast %49 : vector<1x128xf32> to vector<1x128xf32>
    %75 = vector.broadcast %74 : vector<1x128xf32> to vector<16x128xf32>
    %76 = vector.broadcast %cst_29 : f32 to vector<16x128xf32>
    %77 = arith.select %73, %75, %76 : vector<16x128xi1>, vector<16x128xf32>
    %78 = arith.addf %71, %77 : vector<16x128xf32>
    %cst_30 = arith.constant dense<0.000000e+00> : vector<64x128xf32>
    %79 = tpu.matmul %2, %78, %cst_30 {dimension_numbers = #tpu.dot_dimension_numbers<[1], [0], [0], [1], [0, 0, 1, 1], [], []>} : vector<64x16xf32>, vector<16x128xf32>, vector<64x128xf32> -> vector<64x128xf32>
    %80 = tpu.iota {dimensions = array<i32: 0>} : vector<16x128xi32>
    %81 = vector.broadcast %56 : vector<1x128xi32> to vector<16x128xi32>
    %82 = arith.cmpi eq, %80, %81 : vector<16x128xi32>
    %cst_31 = arith.constant 0.000000e+00 : f32
    %83 = vector.shape_cast %54 : vector<1x128xf32> to vector<1x128xf32>
    %84 = vector.broadcast %83 : vector<1x128xf32> to vector<16x128xf32>
    %85 = vector.broadcast %cst_31 : f32 to vector<16x128xf32>
    %86 = arith.select %82, %84, %85 : vector<16x128xi1>, vector<16x128xf32>
    %87 = vector.broadcast %64 : vector<1x128xi32> to vector<16x128xi32>
    %88 = arith.cmpi eq, %80, %87 : vector<16x128xi32>
    %cst_32 = arith.constant 0.000000e+00 : f32
    %89 = vector.shape_cast %50 : vector<1x128xf32> to vector<1x128xf32>
    %90 = vector.broadcast %89 : vector<1x128xf32> to vector<16x128xf32>
    %91 = vector.broadcast %cst_32 : f32 to vector<16x128xf32>
    %92 = arith.select %88, %90, %91 : vector<16x128xi1>, vector<16x128xf32>
    %93 = arith.addf %86, %92 : vector<16x128xf32>
    %94 = vector.shape_cast %79 : vector<64x128xf32> to vector<4x16x128xf32>
    %cst_33 = arith.constant 0.000000e+00 : f32
    %95 = vector.broadcast %cst_33 : f32 to vector<4x128xf32>
    %96 = vector.extract_strided_slice %94 {offsets = [0, 0, 0], sizes = [4, 8, 128], strides = [1, 1, 1]} : vector<4x16x128xf32> to vector<4x8x128xf32>
    %97 = vector.extract_strided_slice %93 {offsets = [0, 0], sizes = [8, 128], strides = [1, 1]} : vector<16x128xf32> to vector<8x128xf32>
    %98 = vector.shape_cast %97 : vector<8x128xf32> to vector<1x8x128xf32>
    %99 = vector.broadcast %98 : vector<1x8x128xf32> to vector<4x8x128xf32>
    %100 = arith.mulf %96, %99 : vector<4x8x128xf32>
    %cst_34 = arith.constant dense<0.000000e+00> : vector<4x128xf32>
    %101 = vector.multi_reduction <add>, %100, %cst_34 [1] : vector<4x8x128xf32> to vector<4x128xf32>
    %102 = arith.addf %95, %101 : vector<4x128xf32>
    %103 = vector.extract_strided_slice %94 {offsets = [0, 8, 0], sizes = [4, 8, 128], strides = [1, 1, 1]} : vector<4x16x128xf32> to vector<4x8x128xf32>
    %104 = vector.extract_strided_slice %93 {offsets = [8, 0], sizes = [8, 128], strides = [1, 1]} : vector<16x128xf32> to vector<8x128xf32>
    %105 = vector.shape_cast %104 : vector<8x128xf32> to vector<1x8x128xf32>
    %106 = vector.broadcast %105 : vector<1x8x128xf32> to vector<4x8x128xf32>
    %107 = arith.mulf %103, %106 : vector<4x8x128xf32>
    %cst_35 = arith.constant dense<0.000000e+00> : vector<4x128xf32>
    %108 = vector.multi_reduction <add>, %107, %cst_35 [1] : vector<4x8x128xf32> to vector<4x128xf32>
    %109 = arith.addf %102, %108 : vector<4x128xf32>
    %c1 = arith.constant 1 : index
    %c0_36 = arith.constant 0 : index
    %c0_37 = arith.constant 0 : index
    %110 = vector.load %arg3[%c1, %c0_36, %c0_37] : memref<2x64x16xf32, #tpu.memory_space<vmem>>, vector<1x64x16xf32>
    %111 = vector.shape_cast %110 : vector<1x64x16xf32> to vector<64x16xf32>
    %c1_38 = arith.constant 1 : index
    %c0_39 = arith.constant 0 : index
    %c0_40 = arith.constant 0 : index
    %112 = vector.load %arg4[%c1_38, %c0_39, %c0_40] : memref<2x2x128xf32, #tpu.memory_space<vmem>>, vector<1x2x128xf32>
    %113 = vector.shape_cast %112 : vector<1x2x128xf32> to vector<2x128xf32>
    %114 = vector.extract_strided_slice %113 {offsets = [0, 0], sizes = [1, 128], strides = [1, 1]} : vector<2x128xf32> to vector<1x128xf32>
    %115 = vector.extract_strided_slice %113 {offsets = [1, 0], sizes = [1, 128], strides = [1, 1]} : vector<2x128xf32> to vector<1x128xf32>
    %116 = vector.extract_strided_slice %0 {offsets = [0, 0], sizes = [1, 128], strides = [1, 1]} : vector<2x128xf32> to vector<1x128xf32>
    %117 = vector.extract_strided_slice %0 {offsets = [1, 0], sizes = [1, 128], strides = [1, 1]} : vector<2x128xf32> to vector<1x128xf32>
    %118 = arith.addf %116, %114 : vector<1x128xf32>
    %cst_41 = arith.constant 2.000000e+00 : f32
    %119 = vector.broadcast %cst_41 : f32 to vector<1x128xf32>
    %120 = arith.mulf %119, %118 : vector<1x128xf32>
    %cst_42 = arith.constant 1.500000e+01 : f32
    %121 = vector.broadcast %cst_42 : f32 to vector<1x128xf32>
    %122 = arith.divf %120, %121 : vector<1x128xf32>
    %cst_43 = arith.constant 1.000000e+00 : f32
    %123 = vector.broadcast %cst_43 : f32 to vector<1x128xf32>
    %124 = arith.subf %122, %123 : vector<1x128xf32>
    %cst_44 = arith.constant -2.000000e+00 : f32
    %cst_45 = arith.constant 2.000000e+00 : f32
    %125 = vector.broadcast %cst_44 : f32 to vector<1x128xf32>
    %126 = arith.maximumf %125, %124 : vector<1x128xf32>
    %127 = vector.broadcast %cst_45 : f32 to vector<1x128xf32>
    %128 = arith.minimumf %127, %126 : vector<1x128xf32>
    %129 = arith.addf %117, %115 : vector<1x128xf32>
    %cst_46 = arith.constant 2.000000e+00 : f32
    %130 = vector.broadcast %cst_46 : f32 to vector<1x128xf32>
    %131 = arith.mulf %130, %129 : vector<1x128xf32>
    %cst_47 = arith.constant 1.500000e+01 : f32
    %132 = vector.broadcast %cst_47 : f32 to vector<1x128xf32>
    %133 = arith.divf %131, %132 : vector<1x128xf32>
    %cst_48 = arith.constant 1.000000e+00 : f32
    %134 = vector.broadcast %cst_48 : f32 to vector<1x128xf32>
    %135 = arith.subf %133, %134 : vector<1x128xf32>
    %cst_49 = arith.constant -2.000000e+00 : f32
    %cst_50 = arith.constant 2.000000e+00 : f32
    %136 = vector.broadcast %cst_49 : f32 to vector<1x128xf32>
    %137 = arith.maximumf %136, %135 : vector<1x128xf32>
    %138 = vector.broadcast %cst_50 : f32 to vector<1x128xf32>
    %139 = arith.minimumf %138, %137 : vector<1x128xf32>
    %cst_51 = arith.constant 1.000000e+00 : f32
    %140 = vector.broadcast %cst_51 : f32 to vector<1x128xf32>
    %141 = arith.addf %128, %140 : vector<1x128xf32>
    %cst_52 = arith.constant 7.500000e+00 : f32
    %142 = vector.broadcast %cst_52 : f32 to vector<1x128xf32>
    %143 = arith.mulf %141, %142 : vector<1x128xf32>
    %cst_53 = arith.constant 0.000000e+00 : f32
    %cst_54 = arith.constant 1.500000e+01 : f32
    %144 = vector.broadcast %cst_53 : f32 to vector<1x128xf32>
    %145 = arith.maximumf %144, %143 : vector<1x128xf32>
    %146 = vector.broadcast %cst_54 : f32 to vector<1x128xf32>
    %147 = arith.minimumf %146, %145 : vector<1x128xf32>
    %cst_55 = arith.constant 1.000000e+00 : f32
    %148 = vector.broadcast %cst_55 : f32 to vector<1x128xf32>
    %149 = arith.addf %139, %148 : vector<1x128xf32>
    %cst_56 = arith.constant 7.500000e+00 : f32
    %150 = vector.broadcast %cst_56 : f32 to vector<1x128xf32>
    %151 = arith.mulf %149, %150 : vector<1x128xf32>
    %cst_57 = arith.constant 0.000000e+00 : f32
    %cst_58 = arith.constant 1.500000e+01 : f32
    %152 = vector.broadcast %cst_57 : f32 to vector<1x128xf32>
    %153 = arith.maximumf %152, %151 : vector<1x128xf32>
    %154 = vector.broadcast %cst_58 : f32 to vector<1x128xf32>
    %155 = arith.minimumf %154, %153 : vector<1x128xf32>
    %156 = math.floor %147 : vector<1x128xf32>
    %157 = math.floor %155 : vector<1x128xf32>
    %158 = arith.subf %147, %156 : vector<1x128xf32>
    %159 = arith.subf %155, %157 : vector<1x128xf32>
    %cst_59 = arith.constant 1.000000e+00 : f32
    %160 = vector.broadcast %cst_59 : f32 to vector<1x128xf32>
    %161 = arith.subf %160, %158 : vector<1x128xf32>
    %cst_60 = arith.constant 1.000000e+00 : f32
    %162 = vector.broadcast %cst_60 : f32 to vector<1x128xf32>
    %163 = arith.subf %162, %159 : vector<1x128xf32>
    %164 = arith.fptosi %156 : vector<1x128xf32> to vector<1x128xi32>
    %165 = arith.fptosi %157 : vector<1x128xf32> to vector<1x128xi32>
    %c1_i32_61 = arith.constant 1 : i32
    %166 = vector.broadcast %c1_i32_61 : i32 to vector<1x128xi32>
    %167 = arith.addi %164, %166 : vector<1x128xi32>
    %c15_i32_62 = arith.constant 15 : i32
    %168 = vector.broadcast %c15_i32_62 : i32 to vector<1x128xi32>
    %169 = arith.minsi %167, %168 : vector<1x128xi32>
    %c1_i32_63 = arith.constant 1 : i32
    %170 = vector.broadcast %c1_i32_63 : i32 to vector<1x128xi32>
    %171 = arith.addi %165, %170 : vector<1x128xi32>
    %c15_i32_64 = arith.constant 15 : i32
    %172 = vector.broadcast %c15_i32_64 : i32 to vector<1x128xi32>
    %173 = arith.minsi %171, %172 : vector<1x128xi32>
    %174 = tpu.iota {dimensions = array<i32: 0>} : vector<16x128xi32>
    %175 = vector.broadcast %164 : vector<1x128xi32> to vector<16x128xi32>
    %176 = arith.cmpi eq, %174, %175 : vector<16x128xi32>
    %cst_65 = arith.constant 0.000000e+00 : f32
    %177 = vector.shape_cast %161 : vector<1x128xf32> to vector<1x128xf32>
    %178 = vector.broadcast %177 : vector<1x128xf32> to vector<16x128xf32>
    %179 = vector.broadcast %cst_65 : f32 to vector<16x128xf32>
    %180 = arith.select %176, %178, %179 : vector<16x128xi1>, vector<16x128xf32>
    %181 = vector.broadcast %169 : vector<1x128xi32> to vector<16x128xi32>
    %182 = arith.cmpi eq, %174, %181 : vector<16x128xi32>
    %cst_66 = arith.constant 0.000000e+00 : f32
    %183 = vector.shape_cast %158 : vector<1x128xf32> to vector<1x128xf32>
    %184 = vector.broadcast %183 : vector<1x128xf32> to vector<16x128xf32>
    %185 = vector.broadcast %cst_66 : f32 to vector<16x128xf32>
    %186 = arith.select %182, %184, %185 : vector<16x128xi1>, vector<16x128xf32>
    %187 = arith.addf %180, %186 : vector<16x128xf32>
    %cst_67 = arith.constant dense<0.000000e+00> : vector<64x128xf32>
    %188 = tpu.matmul %111, %187, %cst_67 {dimension_numbers = #tpu.dot_dimension_numbers<[1], [0], [0], [1], [0, 0, 1, 1], [], []>} : vector<64x16xf32>, vector<16x128xf32>, vector<64x128xf32> -> vector<64x128xf32>
    %189 = tpu.iota {dimensions = array<i32: 0>} : vector<16x128xi32>
    %190 = vector.broadcast %165 : vector<1x128xi32> to vector<16x128xi32>
    %191 = arith.cmpi eq, %189, %190 : vector<16x128xi32>
    %cst_68 = arith.constant 0.000000e+00 : f32
    %192 = vector.shape_cast %163 : vector<1x128xf32> to vector<1x128xf32>
    %193 = vector.broadcast %192 : vector<1x128xf32> to vector<16x128xf32>
    %194 = vector.broadcast %cst_68 : f32 to vector<16x128xf32>
    %195 = arith.select %191, %193, %194 : vector<16x128xi1>, vector<16x128xf32>
    %196 = vector.broadcast %173 : vector<1x128xi32> to vector<16x128xi32>
    %197 = arith.cmpi eq, %189, %196 : vector<16x128xi32>
    %cst_69 = arith.constant 0.000000e+00 : f32
    %198 = vector.shape_cast %159 : vector<1x128xf32> to vector<1x128xf32>
    %199 = vector.broadcast %198 : vector<1x128xf32> to vector<16x128xf32>
    %200 = vector.broadcast %cst_69 : f32 to vector<16x128xf32>
    %201 = arith.select %197, %199, %200 : vector<16x128xi1>, vector<16x128xf32>
    %202 = arith.addf %195, %201 : vector<16x128xf32>
    %203 = vector.shape_cast %188 : vector<64x128xf32> to vector<4x16x128xf32>
    %cst_70 = arith.constant 0.000000e+00 : f32
    %204 = vector.broadcast %cst_70 : f32 to vector<4x128xf32>
    %205 = vector.extract_strided_slice %203 {offsets = [0, 0, 0], sizes = [4, 8, 128], strides = [1, 1, 1]} : vector<4x16x128xf32> to vector<4x8x128xf32>
    %206 = vector.extract_strided_slice %202 {offsets = [0, 0], sizes = [8, 128], strides = [1, 1]} : vector<16x128xf32> to vector<8x128xf32>
    %207 = vector.shape_cast %206 : vector<8x128xf32> to vector<1x8x128xf32>
    %208 = vector.broadcast %207 : vector<1x8x128xf32> to vector<4x8x128xf32>
    %209 = arith.mulf %205, %208 : vector<4x8x128xf32>
    %cst_71 = arith.constant dense<0.000000e+00> : vector<4x128xf32>
    %210 = vector.multi_reduction <add>, %209, %cst_71 [1] : vector<4x8x128xf32> to vector<4x128xf32>
    %211 = arith.addf %204, %210 : vector<4x128xf32>
    %212 = vector.extract_strided_slice %203 {offsets = [0, 8, 0], sizes = [4, 8, 128], strides = [1, 1, 1]} : vector<4x16x128xf32> to vector<4x8x128xf32>
    %213 = vector.extract_strided_slice %202 {offsets = [8, 0], sizes = [8, 128], strides = [1, 1]} : vector<16x128xf32> to vector<8x128xf32>
    %214 = vector.shape_cast %213 : vector<8x128xf32> to vector<1x8x128xf32>
    %215 = vector.broadcast %214 : vector<1x8x128xf32> to vector<4x8x128xf32>
    %216 = arith.mulf %212, %215 : vector<4x8x128xf32>
    %cst_72 = arith.constant dense<0.000000e+00> : vector<4x128xf32>
    %217 = vector.multi_reduction <add>, %216, %cst_72 [1] : vector<4x8x128xf32> to vector<4x128xf32>
    %218 = arith.addf %211, %217 : vector<4x128xf32>
    %219 = arith.maximumf %109, %218 : vector<4x128xf32>
    %220 = arith.addf %109, %218 : vector<4x128xf32>
    %c0_73 = arith.constant 0 : index
    %c0_74 = arith.constant 0 : index
    %c0_75 = arith.constant 0 : index
    %221 = vector.load %arg5[%c0_73, %c0_74, %c0_75] : memref<1x8x128xf32, #tpu.memory_space<vmem>>, vector<1x4x128xf32>
    %222 = vector.shape_cast %221 : vector<1x4x128xf32> to vector<4x128xf32>
    %223 = vector.shape_cast %219 : vector<4x128xf32> to vector<1x4x128xf32>
    tpu.vector_store %arg5[%c0_73, %c0_74, %c0_75], %223 {strides = array<i32>} : memref<1x8x128xf32, #tpu.memory_space<vmem>>, vector<1x4x128xf32>,
    %cst_76 = arith.constant 5.000000e-01 : f32
    %224 = vector.broadcast %cst_76 : f32 to vector<4x128xf32>
    %225 = arith.mulf %220, %224 : vector<4x128xf32>
    %c0_77 = arith.constant 0 : index
    %c4 = arith.constant 4 : index
    %c0_78 = arith.constant 0 : index
    %226 = vector.load %arg5[%c0_77, %c4, %c0_78] : memref<1x8x128xf32, #tpu.memory_space<vmem>>, vector<1x4x128xf32>
    %227 = vector.shape_cast %226 : vector<1x4x128xf32> to vector<4x128xf32>
    %228 = vector.shape_cast %225 : vector<4x128xf32> to vector<1x4x128xf32>
    tpu.vector_store %arg5[%c0_77, %c4, %c0_78], %228 {strides = array<i32>} : memref<1x8x128xf32, #tpu.memory_space<vmem>>, vector<1x4x128xf32>,
    return
  }
  func.func @transform_0(%arg0: i32, %arg1: i32) -> (i32, i32) {
    %c0_i32 = arith.constant 0 : i32
    %c0_i32_0 = arith.constant 0 : i32
    return %c0_i32, %arg1 : i32, i32
  }
  func.func @transform_1(%arg0: i32, %arg1: i32) -> (i32, i32, i32) {
    %c0_i32 = arith.constant 0 : i32
    %c0_i32_0 = arith.constant 0 : i32
    %c0_i32_1 = arith.constant 0 : i32
    return %arg0, %c0_i32, %c0_i32_0 : i32, i32, i32
  }
  func.func @transform_2(%arg0: i32, %arg1: i32) -> (i32, i32, i32) {
    %c0_i32 = arith.constant 0 : i32
    %c0_i32_0 = arith.constant 0 : i32
    return %arg0, %c0_i32, %arg1 : i32, i32, i32
  }
  func.func @transform_3(%arg0: i32, %arg1: i32) -> (i32, i32, i32) {
    %c0_i32 = arith.constant 0 : i32
    %c0_i32_0 = arith.constant 0 : i32
    return %arg0, %c0_i32, %arg1 : i32, i32, i32
  }
}

</mosaic_0001>

<bundles_post_ra>
// kernel: share_layer_forward.3
= control target key start
LH: loop header
LB: loop body
LE: loop exit
PB: predicated region body
PF: predicated region fallthrough
CT: control target
= control target key end

     0   :  { %s915_s12 = smov 0   ;;  %s917_s13 = smov 0   ;;  %s1083_s0 = inlined_call_operand.vmem [shape: f32[2,256], index: 0, kind: input, shape index: {}]   ;;  %s1084_s1 = inlined_call_operand.vmem [shape: f32[2,128,16], index: 1, kind: input, shape index: {}]   ;;  %s1085_s2 = inlined_call_operand.vmem [shape: f32[4,2,256], index: 2, kind: input, shape index: {}]   ;;  %s1086_s3 = inlined_call_operand.vmem [shape: f32[4,8,256], index: 3, kind: output, shape index: {}]  }
   0x1   :  { %s919_s14 = smov 0   ;;  %s921_s15 = smov 0  }
   0x2   :  { %s923_s16 = smov 0   ;;  %s925_s17 = smov 0  }
   0x3   :  { %s927_s18 = smov 0  }
   0x4 LB: > { %s25_s19 = sadd.s32 1, %s880_s15  ;;  %s28_s20 = sadd.s32 1, %s884_s16  ;;  %s892_s18 = sphi %s927_s18, %s13_s18   ;;  %s888_s17 = sphi %s925_s17, %s1100_s17   ;;  %s884_s16 = sphi %s923_s16, %s1099_s16   ;;  %s880_s15 = sphi %s921_s15, %s1098_s15   ;;  %s876_s14 = sphi %s919_s14, %s1097_s14   ;;  %s872_s13 = sphi %s917_s13, %s1096_s13   ;;  %s868_s12 = sphi %s915_s12, %s1095_s12  }
   0x5   : > { %p26_p0 = scmp.ge.s32.totalorder %s25_s19, 2  ;;  %p740_p1 = scmp.ge.s32.totalorder %s892_s18, 1 }
   0x6   : > { %p194_p2 = scmp.lt.s32.totalorder %s892_s18, 9  ;;  %s32_s21 = sadd.s32 1, %s888_s17 }
   0x7   : > { %s1102_s19 = smov (%p26_p0, %s25_s19), 0  ;;  %s1104_s20 = smov (!%p26_p0, %s28_s20), %s884_s16 }
   0x8   : > { %p195_p3 = pnand %p740_p1, %p194_p2  ;;  %p30_p4 = scmp.ge.s32.totalorder %s1104_s20, 2 }
   0x9   : > { %p237_p6 = scmp.lt.s32.totalorder (!%p195_p3), %s872_s13, 1  ;;  %s744_s22 = sshll.u32 (!%p195_p3), %s876_s14, 1 }
   0xa   : > { %s1106_s20 = smov (%p30_p4, %s1104_s20), 0  ;;  %s1108_s21 = smov (!%p30_p4, %s32_s21), %s888_s17 }
   0xb   : > { %p34_p5 = scmp.ge.s32.totalorder %s1108_s21, 2  ;;  %198 = sbr.rel (%p195_p3) target bundleno = 242 (0xf2), region = 32 }
   0xc   : > { %s247_s23 = sadd.s32 (!%p195_p3), %s868_s12, %s744_s22  ;;  %p241_p8 = scmp.lt.s32.totalorder (!%p195_p3), %s876_s14, 1 }
   0xd   : > { %s1110_s21 = smov (%p34_p5, %s1108_s21), 0  ;;  %p248_p7 = scmp.lt.s32.totalorder (!%p195_p3), %s247_s23, 3 }
  0x10   : > { %v894_v0 = vmov 15.0   ;;  %s1112_s13 = smov (!%p237_p6, %s872_s13), 1  ;;  %s1114_s23 = smov (!%p248_p7, %s247_s23), 3  ;;  %v312_v16 = vlaneseq  ;;  %vm329_vm10 = vcmask 130048   ;;  %vm593_vm11 = vcmask 1041409  }
  0x11   : > { %836 = vrcp.f32 %v894_v0  ;;  %s741_s24 = sshll.u32 %s1112_s13, 1  ;;  %s745_s28 = sshll.u32 %s1114_s23, 1  ;;  %vm595_vm12 = vcmask 1042434   ;;  %vm597_vm13 = vcmask 1043459   ;;  %vm599_vm14 = vcmask 1044484  }
  0x12   : > { %s240_s27 = scalar_lea.vmem %s1083_s0, %s741_s24  ;;  %s963_s29 = sadd.s32 %s745_s28, %s1112_s13  ;;  %v313_v19 = vshrl.u32 %v312_v16, 7  ;;  %vm601_vm15 = vcmask 1045509  }
  0x13   : > { %s746_s30 = sshll.u32 %s963_s29, 1  ;;  %v287_v3 = vld [vmem:[%s240_s27] sm:$0x3]  ;;  %s1116_s14 = smov (!%p241_p8, %s876_s14), 1 }
  0x14   : > { %s255_s6 = scalar_lea.vmem %s1085_s2, %s746_s30  ;;  %v314_v23 = vadd.s32 8, %v313_v19  ;;  %s770_s7 = sshll.u32 %s1116_s14, 7 }
  0x15   : > { %v286_v5 = vld [vmem:[%s255_s6] sm:$0x3]  ;;  %s998_s10 = scalar_lea.vmem %s1084_s1, %s770_s7  ;;  %s749_s11 = sshll.u32 %s963_s29, 3 }
  0x16   : > { %v288_v7 = vadd.f32 %v287_v3, %v286_v5  ;;  %v270_v51 = vld [vmem:[%s998_s10] sm:$0xff]  ;;  %v271_v55 = vld [vmem:[%s998_s10 + $0x8] sm:$0xff]  ;;  %v272_v59 = vld [vmem:[%s998_s10 + $0x10] sm:$0xff]  ;;  %s267_s14 = scalar_lea.vmem %s1086_s3, %s749_s11 }
  0x17   : > { %v837_v1 = vpop.eup %836  ;;  %v274_v52 = vld [vmem:[%s998_s10 + $0x20] sm:$0xff]  ;;  %v275_v56 = vld [vmem:[%s998_s10 + $0x28] sm:$0xff]  ;;  %v276_v60 = vld [vmem:[%s998_s10 + $0x30] sm:$0xff] }
  0x18   : > { %v291_v2 = vmul.f32 15.0, %v837_v1  ;;  %vm295_vm0 = vweird.f32 %v837_v1  ;;  %v289_v9 = vmul.f32 2.0, %v288_v7  ;;  %v278_v53 = vld [vmem:[%s998_s10 + $0x40] sm:$0xff]  ;;  %v279_v57 = vld [vmem:[%s998_s10 + $0x48] sm:$0xff]  ;;  %v280_v61 = vld [vmem:[%s998_s10 + $0x50] sm:$0xff] }
  0x19   : > { %v282_v54 = vld [vmem:[%s998_s10 + $0x60] sm:$0xff]  ;;  %v283_v58 = vld [vmem:[%s998_s10 + $0x68] sm:$0xff]  ;;  %v284_v62 = vld [vmem:[%s998_s10 + $0x70] sm:$0xff] }
  0x1a   : > { %v292_v4 = vsub.f32 1.0, %v291_v2  ;;  %v273_v63 = vld [vmem:[%s998_s10 + $0x18] sm:$0xff] }
  0x1b   : > { %v277_v0 = vld [vmem:[%s998_s10 + $0x38] sm:$0xff] }
  0x1c   : > { %v293_v6 = vmul.f32 %v837_v1, %v292_v4  ;;  %v285_v2 = vld [vmem:[%s998_s10 + $0x78] sm:$0xff] }
  0x1e   : > { %v294_v8 = vadd.f32 %v837_v1, %v293_v6 }
  0x20   : > { %v296_v10 = vsel %vm295_vm0, %v837_v1, %v294_v8  ;;  %v281_v1 = vld [vmem:[%s998_s10 + $0x58] sm:$0xff]  ;;  %vm603_vm0 = vcmask 1046534  }
  0x21   : > { %v297_v11 = vmul.f32 %v296_v10, %v289_v9 }
  0x23   : > { %v750_v12 = vadd.f32 -1.0, %v297_v11 }
  0x25   : > { %v751_v13 = vclamps-f32 %v750_v12, 2.0 }
  0x27   : > { %v301_v14 = vadd.f32 1.0, %v751_v13 }
  0x29   : > { %v302_v15 = vmul.f32 7.5, %v301_v14 }
  0x2b   : > { %v303_v17 = vmax.f32 %v302_v15, 0.0 }
  0x2d   : > { %v304_v18 = vmin.f32 %v303_v17, 15.0 }
  0x2f   : > { %v305_v20 = vfloor.f32 %v304_v18 }
  0x31   : > { %v306_v21 = vsub.f32 %v304_v18, %v305_v20  ;;  %v778_v22 = vcvt.f32.s32 %v305_v20 }
  0x33   : > { %v307_v24 = vsub.f32 1.0, %v306_v21  ;;  %v309_v25 = vadd.s32 1, %v778_v22  ;;  %v315_v26 = vperm.slane %v778_v22, 0  ;;  %v324_v27 = vperm.slane %v306_v21, 0 }
  0x34   : > { %v443_v28 = vperm.slane %v778_v22, 1  ;;  %v452_v39 = vperm.slane %v306_v21, 1 }
  0x35   : > { %vm310_vm1 = vcmp.lt.s32.totalorder %v309_v25, 15  ;;  %vm971_vm2 = vcmp.eq.s32.totalorder %v314_v23, %v315_v26  ;;  %v318_v30 = vperm.slane %v307_v24, 0  ;;  %v446_v31 = vperm.slane %v307_v24, 1 }
  0x36   : > { %v311_v32 = vsel %vm310_vm1, %v309_v25, 15  ;;  %vm975_vm3 = vcmp.eq.s32.totalorder %v313_v19, %v443_v28  ;;  %vm979_vm4 = vcmp.eq.s32.totalorder %v314_v23, %v443_v28  ;;  %vm983_vm5 = vcmp.eq.s32.totalorder %v313_v19, %v315_v26 }
  0x37   : > { %v321_v36 = vperm.slane %v311_v32, 0  ;;  %v447_v37 = vsel %vm975_vm3, %v446_v31, 0.0  ;;  %v448_v38 = vsel %vm979_vm4, %v446_v31, 0.0  ;;  %v320_v40 = vsel %vm971_vm2, %v318_v30, 0.0 }
  0x38   : > { %v449_v41 = vperm.slane %v311_v32, 1  ;;  %v319_v42 = vsel %vm983_vm5, %v318_v30, 0.0  ;;  %vm605_vm1 = vcmask 1047559  }
  0x39   : > { %vm323_vm6 = vcmp.eq.s32.totalorder %v314_v23, %v321_v36  ;;  %vm322_vm7 = vcmp.eq.s32.totalorder %v313_v19, %v321_v36 }
  0x3a   : > { %v326_v43 = vsel %vm323_vm6, %v324_v27, 0.0  ;;  %vm450_vm8 = vcmp.eq.s32.totalorder %v313_v19, %v449_v41  ;;  %vm451_vm9 = vcmp.eq.s32.totalorder %v314_v23, %v449_v41  ;;  %v325_v44 = vsel %vm322_vm7, %v324_v27, 0.0 }
  0x3b   : > { %v328_v45 = vadd.f32 %v326_v43, %v320_v40  ;;  %v453_v46 = vsel %vm450_vm8, %v452_v39, 0.0  ;;  %v454_v47 = vsel %vm451_vm9, %v452_v39, 0.0  ;;  %v327_v48 = vadd.f32 %v325_v44, %v319_v42 }
  0x3c   : > { %v1000_v49 = vadd.f32 %v453_v46, %v447_v37  ;;  %v1002_v50 = vadd.f32 %v454_v47, %v448_v38 }
  0x3d   : > { %392 = vmatpush.msra.mxu0 %v328_v45  ;;  %771 = vmatpush.msra.mxu1 %v328_v45 }
  0x3e   : > { %772 = vmatpush.msra.mxu2 %v328_v45  ;;  %773 = vmatpush.msra.mxu3 %v328_v45 }
  0x3f   : > { %393 = vmatpush.msra.mxu0 %v327_v48  ;;  %774 = vmatpush.msra.mxu1 %v327_v48 }
  0x40   : > { %775 = vmatpush.msra.mxu2 %v327_v48  ;;  %776 = vmatpush.msra.mxu3 %v327_v48 }
  0x41   : > { %752 = vmatmul.msk.f32.vlgmr.msra.gmra.mxu0 %vm329_vm10, %v270_v51  ;;  %756 = vmatmul.msk.f32.vlgmr.msra.gmra.mxu1 %vm329_vm10, %v274_v52 }
  0x42   : > { %760 = vmatmul.msk.f32.vlgmr.msra.gmra.mxu2 %vm329_vm10, %v278_v53  ;;  %764 = vmatmul.msk.f32.vlgmr.msra.gmra.mxu3 %vm329_vm10, %v282_v54 }
  0x49   : > { %753 = vmatmul.msk.f32.gmra.mxu0 %vm329_vm10, %v271_v55  ;;  %757 = vmatmul.msk.f32.gmra.mxu1 %vm329_vm10, %v275_v56 }
  0x4a   : > { %761 = vmatmul.msk.f32.gmra.mxu2 %vm329_vm10, %v279_v57  ;;  %765 = vmatmul.msk.f32.gmra.mxu3 %vm329_vm10, %v283_v58 }
  0x51   : > { %754 = vmatmul.msk.f32.gmra.mxu0 %vm329_vm10, %v272_v59  ;;  %758 = vmatmul.msk.f32.gmra.mxu1 %vm329_vm10, %v276_v60 }
  0x52   : > { %762 = vmatmul.msk.f32.gmra.mxu2 %vm329_vm10, %v280_v61  ;;  %766 = vmatmul.msk.f32.gmra.mxu3 %vm329_vm10, %v284_v62 }
  0x59   : > { %755 = vmatmul.msk.f32.gmra.mxu0 %vm329_vm10, %v273_v63  ;;  %759 = vmatmul.msk.f32.gmra.mxu1 %vm329_vm10, %v277_v0 }
  0x5a   : > { %763 = vmatmul.msk.f32.gmra.mxu2 %vm329_vm10, %v281_v1  ;;  %767 = vmatmul.msk.f32.gmra.mxu3 %vm329_vm10, %v285_v2 }
  0xbe   : > { %v395_v3 = vpop.f32.mrf.mxu0  ;;  %v407_v4 = vpop.f32.mrf.mxu1 }
  0xbf   : > { %v457_v5 = vmul.f32 %v1000_v49, %v395_v3  ;;  %v459_v6 = vmul.f32 %v1000_v49, %v407_v4 }
  0xc1   : > { %v465_v7 = vrot.slane %v457_v5, 4  ;;  %v477_v8 = vrot.slane %v459_v6, 4 }
  0xc3   : > { %v466_v9 = vadd.f32 %v465_v7, %v457_v5  ;;  %v478_v10 = vadd.f32 %v477_v8, %v459_v6 }
  0xc5   : > { %v419_v11 = vpop.f32.mrf.mxu2  ;;  %v431_v12 = vpop.f32.mrf.mxu3  ;;  %v467_v13 = vrot.slane %v466_v9, 2  ;;  %v479_v14 = vrot.slane %v478_v10, 2 }
  0xc6   : > { %v461_v15 = vmul.f32 %v1000_v49, %v419_v11  ;;  %v463_v16 = vmul.f32 %v1000_v49, %v431_v12  ;;  %v398_v17 = vpop.f32.mrf.mxu0  ;;  %v410_v18 = vpop.f32.mrf.mxu1 }
  0xc7   : > { %v521_v19 = vmul.f32 %v1002_v50, %v398_v17  ;;  %v523_v20 = vmul.f32 %v1002_v50, %v410_v18  ;;  %v468_v25 = vadd.f32 %v467_v13, %v466_v9  ;;  %v480_v26 = vadd.f32 %v479_v14, %v478_v10 }
  0xc8   : > { %v489_v21 = vrot.slane %v461_v15, 4  ;;  %v501_v22 = vrot.slane %v463_v16, 4 }
  0xc9   : > { %v529_v23 = vrot.slane %v521_v19, 4  ;;  %v541_v24 = vrot.slane %v523_v20, 4  ;;  %v469_v37 = vrot.slane %v468_v25, 1  ;;  %v481_v38 = vrot.slane %v480_v26, 1 }
  0xca   : > { %v490_v27 = vadd.f32 %v489_v21, %v461_v15  ;;  %v502_v28 = vadd.f32 %v501_v22, %v463_v16 }
  0xcb   : > { %v530_v29 = vadd.f32 %v529_v23, %v521_v19  ;;  %v542_v30 = vadd.f32 %v541_v24, %v523_v20  ;;  %v470_v57 = vadd.f32 %v469_v37, %v468_v25  ;;  %v482_v58 = vadd.f32 %v481_v38, %v480_v26 }
  0xcc   : > { %v491_v31 = vrot.slane %v490_v27, 2  ;;  %v503_v32 = vrot.slane %v502_v28, 2 }
  0xcd   : > { %v531_v33 = vrot.slane %v530_v29, 2  ;;  %v543_v34 = vrot.slane %v542_v30, 2  ;;  %v422_v35 = vpop.f32.mrf.mxu2  ;;  %v434_v36 = vpop.f32.mrf.mxu3 }
  0xce   : > { %v525_v39 = vmul.f32 %v1002_v50, %v422_v35  ;;  %v527_v40 = vmul.f32 %v1002_v50, %v434_v36  ;;  %v401_v41 = vpop.f32.mrf.mxu0  ;;  %v413_v42 = vpop.f32.mrf.mxu1  ;;  %v492_v47 = vadd.f32 %v491_v31, %v490_v27  ;;  %v504_v48 = vadd.f32 %v503_v32, %v502_v28 }
  0xcf   : > { %v532_v43 = vadd.f32 %v531_v33, %v530_v29  ;;  %v544_v44 = vadd.f32 %v543_v34, %v542_v30  ;;  %v458_v45 = vmul.f32 %v1000_v49, %v401_v41  ;;  %v460_v46 = vmul.f32 %v1000_v49, %v413_v42 }
  0xd0   : > { %v553_v51 = vrot.slane %v525_v39, 4  ;;  %v565_v52 = vrot.slane %v527_v40, 4  ;;  %v493_v3 = vrot.slane %v492_v47, 1  ;;  %v505_v4 = vrot.slane %v504_v48, 1 }
  0xd1   : > { %v533_v53 = vrot.slane %v532_v43, 1  ;;  %v545_v54 = vrot.slane %v544_v44, 1  ;;  %v471_v55 = vrot.slane %v458_v45, 4  ;;  %v483_v56 = vrot.slane %v460_v46, 4 }
  0xd2   : > { %v554_v59 = vadd.f32 %v553_v51, %v525_v39  ;;  %v566_v60 = vadd.f32 %v565_v52, %v527_v40  ;;  %v494_v23 = vadd.f32 %v493_v3, %v492_v47  ;;  %v506_v24 = vadd.f32 %v505_v4, %v504_v48 }
  0xd3   : > { %v534_v61 = vadd.f32 %v533_v53, %v532_v43  ;;  %v546_v62 = vadd.f32 %v545_v54, %v544_v44  ;;  %v472_v63 = vadd.f32 %v471_v55, %v458_v45  ;;  %v484_v0 = vadd.f32 %v483_v56, %v460_v46 }
  0xd4   : > { %v555_v1 = vrot.slane %v554_v59, 2  ;;  %v567_v2 = vrot.slane %v566_v60, 2 }
  0xd5   : > { %v1046_v5 = vadd.f32 %v534_v61, %v470_v57  ;;  %v1048_v6 = vadd.f32 %v546_v62, %v482_v58  ;;  %v425_v7 = vpop.f32.mrf.mxu2  ;;  %v437_v8 = vpop.f32.mrf.mxu3  ;;  %v473_v15 = vrot.slane %v472_v63, 2  ;;  %v485_v16 = vrot.slane %v484_v0, 2 }
  0xd6   : > { %v556_v9 = vadd.f32 %v555_v1, %v554_v59  ;;  %v568_v10 = vadd.f32 %v567_v2, %v566_v60  ;;  %v462_v11 = vmul.f32 %v1000_v49, %v425_v7  ;;  %v464_v12 = vmul.f32 %v1000_v49, %v437_v8  ;;  %v404_v13 = vpop.f32.mrf.mxu0  ;;  %v416_v14 = vpop.f32.mrf.mxu1 }
  0xd7   : > { %v522_v17 = vmul.f32 %v1002_v50, %v404_v13  ;;  %v524_v18 = vmul.f32 %v1002_v50, %v416_v14  ;;  %v474_v30 = vadd.f32 %v473_v15, %v472_v63  ;;  %v486_v31 = vadd.f32 %v485_v16, %v484_v0 }
  0xd8   : > { %v557_v19 = vrot.slane %v556_v9, 1  ;;  %v569_v20 = vrot.slane %v568_v10, 1  ;;  %v495_v21 = vrot.slane %v462_v11, 4  ;;  %v507_v22 = vrot.slane %v464_v12, 4 }
  0xd9   : > { %v535_v25 = vrot.slane %v522_v17, 4  ;;  %v547_v26 = vrot.slane %v524_v18, 4  ;;  %v475_v44 = vrot.slane %v474_v30, 1  ;;  %v487_v45 = vrot.slane %v486_v31, 1 }
  0xda   : > { %v558_v27 = vadd.f32 %v557_v19, %v556_v9  ;;  %v570_v28 = vadd.f32 %v569_v20, %v568_v10  ;;  %v496_v29 = vadd.f32 %v495_v21, %v462_v11  ;;  %v508_v49 = vadd.f32 %v507_v22, %v464_v12 }
  0xdb   : > { %v536_v32 = vadd.f32 %v535_v25, %v522_v17  ;;  %v548_v33 = vadd.f32 %v547_v26, %v524_v18  ;;  %v476_v58 = vadd.f32 %v475_v44, %v474_v30  ;;  %v488_v59 = vadd.f32 %v487_v45, %v486_v31 }
  0xdc   : > { %v581_v34 = vadd.f32 %v558_v27, %v494_v23  ;;  %v583_v35 = vadd.f32 %v570_v28, %v506_v24  ;;  %v497_v36 = vrot.slane %v496_v29, 2  ;;  %v509_v41 = vrot.slane %v508_v49, 2 }
  0xdd   : > { %v537_v37 = vrot.slane %v536_v32, 2  ;;  %v549_v38 = vrot.slane %v548_v33, 2  ;;  %v428_v39 = vpop.f32.mrf.mxu2  ;;  %v440_v40 = vpop.f32.mrf.mxu3 }
  0xde   : > { %v526_v42 = vmul.f32 %v1002_v50, %v428_v39  ;;  %v528_v43 = vmul.f32 %v1002_v50, %v440_v40  ;;  %v498_v52 = vadd.f32 %v497_v36, %v496_v29  ;;  %v510_v55 = vadd.f32 %v509_v41, %v508_v49 }
  0xdf   : > { %v538_v46 = vadd.f32 %v537_v37, %v536_v32  ;;  %v550_v47 = vadd.f32 %v549_v38, %v548_v33 }
  0xe0   : > { %v559_v48 = vrot.slane %v526_v42, 4  ;;  %v571_v51 = vrot.slane %v528_v43, 4  ;;  %v499_v50 = vrot.slane %v498_v52, 1  ;;  %v511_v2 = vrot.slane %v510_v55, 1 }
  0xe1   : > { %v539_v53 = vrot.slane %v538_v46, 1  ;;  %v551_v54 = vrot.slane %v550_v47, 1 }
  0xe2   : > { %v560_v56 = vadd.f32 %v559_v48, %v526_v42  ;;  %v572_v57 = vadd.f32 %v571_v51, %v528_v43  ;;  %v500_v11 = vadd.f32 %v499_v50, %v498_v52  ;;  %v512_v13 = vadd.f32 %v511_v2, %v510_v55 }
  0xe3   : > { %v540_v60 = vadd.f32 %v539_v53, %v538_v46  ;;  %v552_v61 = vadd.f32 %v551_v54, %v550_v47 }
  0xe4   : > { %v561_v62 = vrot.slane %v560_v56, 2  ;;  %v573_v63 = vrot.slane %v572_v57, 2 }
  0xe5   : > { %v578_v0 = vadd.f32 %v540_v60, %v476_v58  ;;  %v580_v1 = vadd.f32 %v552_v61, %v488_v59 }
  0xe6   : > { %v562_v3 = vadd.f32 %v561_v62, %v560_v56  ;;  %v574_v4 = vadd.f32 %v573_v63, %v572_v57 }
  0xe7   : > { %v594_v7 = vsel %vm593_vm11, %v578_v0, %v1046_v5 }
  0xe8   : > { %v596_v8 = vsel %vm595_vm12, %v1048_v6, %v594_v7  ;;  %v563_v9 = vrot.slane %v562_v3, 1  ;;  %v575_v10 = vrot.slane %v574_v4, 1 }
  0xe9   : > { %v598_v12 = vsel %vm597_vm13, %v580_v1, %v596_v8 }
  0xea   : > { %v564_v14 = vadd.f32 %v563_v9, %v562_v3  ;;  %v600_v15 = vsel %vm599_vm14, %v581_v34, %v598_v12  ;;  %v576_v16 = vadd.f32 %v575_v10, %v574_v4 }
  0xec   : > { %v582_v17 = vadd.f32 %v564_v14, %v500_v11  ;;  %v584_v18 = vadd.f32 %v576_v16, %v512_v13 }
  0xee   : > { %v602_v19 = vsel %vm601_vm15, %v582_v17, %v600_v15 }
  0xef   : > { %v604_v5 = vsel %vm603_vm0, %v583_v35, %v602_v19 }
  0xf0   : > { %v606_v6 = vsel %vm605_vm1, %v584_v18, %v604_v5 }
  0xf1   : > { %608 = vst [vmem:[%s267_s14] sm:$0xff] %v606_v6 }
  0xf2 PF: > { %s13_s18 = sadd.s32 1, %s892_s18   ;;  %s1095_s12 = smov %s880_s15 }
  0xf3   : > { %p10_p9 = scmp.ge.s32.totalorder %s13_s18, 10   ;;  %s1096_s13 = smov %s884_s16 }
  0xf4   : > { %s1097_s14 = smov %s888_s17  ;;  %s1098_s15 = smov %s1102_s19 }
  0xf5   : > { %s1099_s16 = smov %s1106_s20  ;;  %s1100_s17 = smov %s1110_s21 }
  0xf6   :  { %12 = sbr.rel (!%p10_p9) target bundleno = 4 (0x4), region = 68 }

// kernel: share_layer_forward.2
= control target key start
LH: loop header
LB: loop body
LE: loop exit
PB: predicated region body
PF: predicated region fallthrough
CT: control target
= control target key end

     0   :  { %s996_s12 = smov 0   ;;  %s998_s13 = smov 0   ;;  %s1249_s0 = inlined_call_operand.vmem [shape: f32[2,256], index: 0, kind: input, shape index: {}]   ;;  %s1250_s1 = inlined_call_operand.vmem [shape: f32[4,64,16], index: 1, kind: input, shape index: {}]   ;;  %s1251_s2 = inlined_call_operand.vmem [shape: f32[4,2,256], index: 2, kind: input, shape index: {}]   ;;  %s1252_s3 = inlined_call_operand.vmem [shape: f32[2,8,256], index: 3, kind: output, shape index: {}]  }
   0x1   :  { %s1000_s14 = smov 0   ;;  %s1002_s15 = smov 0  }
   0x2   :  { %s1004_s16 = smov 0   ;;  %s1006_s17 = smov 0  }
   0x3   :  { %s1008_s18 = smov 0  }
   0x4 LB: > { %s22_s19 = sadd.s32 1, %s965_s16  ;;  %s25_s20 = sadd.s32 1, %s969_s17  ;;  %s973_s18 = sphi %s1008_s18, %s13_s18   ;;  %s969_s17 = sphi %s1006_s17, %s1262_s17   ;;  %s965_s16 = sphi %s1004_s16, %s1261_s16   ;;  %s961_s15 = sphi %s1002_s15, %s1260_s15   ;;  %s957_s14 = sphi %s1000_s14, %s1259_s14   ;;  %s953_s13 = sphi %s998_s13, %s1258_s13   ;;  %s949_s12 = sphi %s996_s12, %s1257_s12  }
   0x5   : > { %p23_p0 = scmp.ge.s32.totalorder %s22_s19, 2  ;;  %p93_p1 = scmp.ne.s32.totalorder %s953_s13, %s949_s12 }
   0x6   : > { %p94_p2 = scmp.eq.s32.totalorder %s973_s18, 0  ;;  %s86_s24 = sadd.s32 1, %s953_s13 }
   0x7   : > { %s1264_s19 = smov (%p23_p0, %s22_s19), 0  ;;  %s1266_s20 = smov (!%p23_p0, %s25_s20), %s969_s17 }
   0x8   : > { %p95_p3 = por %p94_p2, %p93_p1  ;;  %p27_p4 = scmp.ge.s32.totalorder %s1266_s20, 2 }
   0x9   : > { %s82_s21 = ssub.s32 %s965_s16, %s1264_s19  ;;  %p806_p6 = scmp.ge.s32.totalorder %s973_s18, 4 }
   0xa   : > { %s1268_s20 = smov (%p27_p4, %s1266_s20), 0 }
   0xb   : > { %s81_s22 = ssub.s32 %s969_s17, %s1268_s20  ;;  %147 = sbr.rel (%p806_p6) target bundleno = 24 (0x18), region = 16 }
   0xc   : > { %s83_s23 = sor.u32 %s82_s21, %s81_s22 }
   0xd   : > { %p84_p5 = scmp.eq.s32.totalorder %s83_s23, 0 }
   0xf   : > { %s1047_s25 = scalar_select %p84_p5, %s953_s13, %s86_s24  }
  0x10   : > { %167 = sbr.rel (!%p95_p3) target bundleno = 24 (0x18), region = 28  ;;  %s169_s26 = sand.u32 (%p95_p3), 1, %s953_s13  }
  0x11   : > { %s850_s27 = sshll.u32 (%p95_p3), %s969_s17, 2  ;;  %s807_s28 = sshll.u32 (%p95_p3), %s169_s26, 2 }
  0x12   : > { %s174_s29 = sadd.s32 (%p95_p3), %s965_s16, %s850_s27  ;;  %s171_s7 = scalar_lea.vmem (%p95_p3), [#allocation2], %s807_s28 }
  0x13   : > { %s810_s30 = sshll.u32 (%p95_p3), %s174_s29, 1 }
  0x14   : > { %s176_s6 = scalar_lea.vmem (%p95_p3), %s1251_s2, %s810_s30 }
  0x15   : > { %v193_v0 = vld [vmem:[%s176_s6] sm:$0x3]  ;;  %v195_v1 = vld [vmem:[%s176_s6 + $0x4] sm:$0x3] }
  0x16   : > { %194 = vst [vmem:[%s171_s7] sm:$0x3] %v193_v0 }
  0x17   : > { %196 = vst [vmem:[%s171_s7 + $0x2] sm:$0x3] %v195_v1 }
  0x18 PF: > { %p811_p7 = scmp.ge.s32.totalorder %s973_s18, 1  ;;  %p215_p8 = scmp.lt.s32.totalorder %s973_s18, 5 }
  0x1a   : > { %p216_p9 = pnand %p811_p7, %p215_p8 }
  0x1b   : > { %s222_s8 = sand.u32 (!%p216_p9), 1, %s949_s12   ;;  %p258_p10 = scmp.lt.s32.totalorder (!%p216_p9), %s957_s14, 1 }
  0x1c   : > { %219 = sbr.rel (%p216_p9) target bundleno = 261 (0x105), region = 62  ;;  %s812_s9 = sshll.u32 (!%p216_p9), %s222_s8, 2 }
  0x1d   : > { %s224_s23 = scalar_lea.vmem (!%p216_p9), [#allocation2], %s812_s9  ;;  %s814_s12 = sshll.u32 (!%p216_p9), %s961_s15, 1 }
  0x1e   : > { %p263_p11 = scmp.lt.s32.totalorder (!%p216_p9), %s814_s12, 3  ;;  %p270_p12 = scmp.lt.s32.totalorder (!%p216_p9), %s961_s15, 1 }
  0x21   : > { %v975_v2 = vmov 15.0   ;;  %s1270_s14 = smov (!%p258_p10, %s957_s14), 1  ;;  %v287_v3 = vld [vmem:[%s224_s23] sm:$0x3]  ;;  %v837_v4 = vld [vmem:[%s224_s23 + $0x2] sm:$0x3]  ;;  %v312_v24 = vlaneseq }
  0x22   : > { %917 = vrcp.f32 %v975_v2  ;;  %s813_s10 = sshll.u32 %s1270_s14, 1  ;;  %s1272_s12 = smov (!%p263_p11, %s814_s12), 3  ;;  %vm329_vm11 = vcmask 130048  }
  0x23   : > { %s261_s22 = scalar_lea.vmem %s1249_s0, %s813_s10  ;;  %v1067_v29 = vshrl.u32 %v312_v24, 7  ;;  %s851_s24 = sshll.u32 %s1272_s12, 6 }
  0x24   : > { %v278_v6 = vld [vmem:[%s261_s22] sm:$0x3]  ;;  %s1120_s28 = scalar_lea.vmem %s1250_s1, %s851_s24  ;;  %s1274_s15 = smov (!%p270_p12, %s961_s15), 1 }
  0x25   : > { %v288_v8 = vadd.f32 %v287_v3, %v278_v6  ;;  %v484_v9 = vadd.f32 %v837_v4, %v278_v6  ;;  %v1071_v34 = vadd.s32 8, %v1067_v29  ;;  %v279_v3 = vld [vmem:[%s1120_s28] sm:$0xff]  ;;  %s817_s29 = sshll.u32 %s1274_s15, 1 }
  0x26   : > { %v283_v4 = vld [vmem:[%s1120_s28 + $0x20] sm:$0xff]  ;;  %s275_s30 = sadd.s32 %s817_s29, %s1270_s14 }
  0x27   : > { %v289_v12 = vmul.f32 2.0, %v288_v8  ;;  %v485_v13 = vmul.f32 2.0, %v484_v9  ;;  %v833_v6 = vld [vmem:[%s1120_s28 + $0x60] sm:$0xff]  ;;  %v284_v8 = vld [vmem:[%s1120_s28 + $0x28] sm:$0xff]  ;;  %s818_s4 = sshll.u32 %s275_s30, 3 }
  0x28   : > { %v918_v5 = vpop.eup %917  ;;  %v830_v9 = vld [vmem:[%s1120_s28 + $0x48] sm:$0xff]  ;;  %s277_s5 = scalar_lea.vmem %s1252_s3, %s818_s4 }
  0x29   : > { %v291_v7 = vmul.f32 15.0, %v918_v5  ;;  %vm295_vm0 = vweird.f32 %v918_v5 }
  0x2b   : > { %v292_v10 = vsub.f32 1.0, %v291_v7  ;;  %v280_v7 = vld [vmem:[%s1120_s28 + $0x8] sm:$0xff] }
  0x2d   : > { %v293_v11 = vmul.f32 %v918_v5, %v292_v10  ;;  %v834_v10 = vld [vmem:[%s1120_s28 + $0x68] sm:$0xff] }
  0x2f   : > { %v294_v14 = vadd.f32 %v918_v5, %v293_v11  ;;  %v281_v11 = vld [vmem:[%s1120_s28 + $0x10] sm:$0xff] }
  0x31   : > { %v296_v15 = vsel %vm295_vm0, %v918_v5, %v294_v14  ;;  %v829_v5 = vld [vmem:[%s1120_s28 + $0x40] sm:$0xff]  ;;  %v835_v14 = vld [vmem:[%s1120_s28 + $0x70] sm:$0xff] }
  0x32   : > { %v297_v16 = vmul.f32 %v296_v15, %v289_v12  ;;  %v486_v17 = vmul.f32 %v485_v13, %v296_v15  ;;  %v285_v12 = vld [vmem:[%s1120_s28 + $0x30] sm:$0xff]  ;;  %v282_v15 = vld [vmem:[%s1120_s28 + $0x18] sm:$0xff] }
  0x33   : > { %v831_v13 = vld [vmem:[%s1120_s28 + $0x50] sm:$0xff] }
  0x34   : > { %v819_v18 = vadd.f32 -1.0, %v297_v16  ;;  %v838_v19 = vadd.f32 -1.0, %v486_v17  ;;  %v286_v16 = vld [vmem:[%s1120_s28 + $0x38] sm:$0xff] }
  0x35   : > { %v832_v17 = vld [vmem:[%s1120_s28 + $0x58] sm:$0xff] }
  0x36   : > { %v820_v20 = vclamps-f32 %v819_v18, 2.0  ;;  %v839_v21 = vclamps-f32 %v838_v19, 2.0  ;;  %v836_v18 = vld [vmem:[%s1120_s28 + $0x78] sm:$0xff] }
  0x38   : > { %v301_v22 = vadd.f32 1.0, %v820_v20  ;;  %v490_v23 = vadd.f32 1.0, %v839_v21 }
  0x3a   : > { %v302_v25 = vmul.f32 7.5, %v301_v22  ;;  %v491_v26 = vmul.f32 7.5, %v490_v23 }
  0x3c   : > { %v303_v27 = vmax.f32 %v302_v25, 0.0  ;;  %v492_v28 = vmax.f32 %v491_v26, 0.0 }
  0x3e   : > { %v304_v30 = vmin.f32 %v303_v27, 15.0  ;;  %v493_v31 = vmin.f32 %v492_v28, 15.0 }
  0x40   : > { %v305_v32 = vfloor.f32 %v304_v30  ;;  %v494_v33 = vfloor.f32 %v493_v31 }
  0x42   : > { %v1073_v35 = vsub.f32 %v304_v30, %v305_v32  ;;  %v1075_v36 = vcvt.f32.s32 %v305_v32  ;;  %v1077_v37 = vsub.f32 %v493_v31, %v494_v33  ;;  %v1079_v38 = vcvt.f32.s32 %v494_v33 }
  0x44   : > { %v307_v39 = vsub.f32 1.0, %v1073_v35  ;;  %v309_v40 = vadd.s32 1, %v1075_v36  ;;  %v315_v41 = vperm.slane %v1075_v36, 0  ;;  %v496_v42 = vsub.f32 1.0, %v1077_v37 }
  0x45   : > { %v498_v43 = vadd.s32 1, %v1079_v38  ;;  %v501_v44 = vperm.slane %v1079_v38, 0  ;;  %v324_v47 = vperm.slane %v1073_v35, 0  ;;  %v510_v53 = vperm.slane %v1077_v37, 0 }
  0x46   : > { %vm310_vm1 = vcmp.lt.s32.totalorder %v309_v40, 15  ;;  %vm1088_vm2 = vcmp.eq.s32.totalorder %v1071_v34, %v315_v41  ;;  %v318_v46 = vperm.slane %v307_v39, 0  ;;  %v504_v50 = vperm.slane %v496_v42, 0 }
  0x47   : > { %v1095_v48 = vsel %vm310_vm1, %v309_v40, 15  ;;  %vm499_vm3 = vcmp.lt.s32.totalorder %v498_v43, 15  ;;  %vm1098_vm4 = vcmp.eq.s32.totalorder %v1071_v34, %v501_v44  ;;  %vm316_vm6 = vcmp.eq.s32.totalorder %v1067_v29, %v315_v41 }
  0x48   : > { %v321_v51 = vperm.slane %v1095_v48, 0  ;;  %v1105_v52 = vsel %vm499_vm3, %v498_v43, 15  ;;  %v320_v54 = vsel %vm1088_vm2, %v318_v46, 0.0  ;;  %v506_v56 = vsel %vm1098_vm4, %v504_v50, 0.0 }
  0x49   : > { %v507_v55 = vperm.slane %v1105_v52, 0  ;;  %v319_v60 = vsel %vm316_vm6, %v318_v46, 0.0  ;;  %vm502_vm9 = vcmp.eq.s32.totalorder %v1067_v29, %v501_v44  ;;  %v401_v19 = vperm.slane %v1095_v48, 1 }
  0x4a   : > { %vm323_vm5 = vcmp.eq.s32.totalorder %v1071_v34, %v321_v51  ;;  %vm322_vm8 = vcmp.eq.s32.totalorder %v1067_v29, %v321_v51  ;;  %v505_v0 = vsel %vm502_vm9, %v504_v50, 0.0  ;;  %v586_v20 = vperm.slane %v1105_v52, 1 }
  0x4b   : > { %v326_v57 = vsel %vm323_vm5, %v324_v47, 0.0  ;;  %vm509_vm7 = vcmp.eq.s32.totalorder %v1071_v34, %v507_v55  ;;  %v325_v62 = vsel %vm322_vm8, %v324_v47, 0.0  ;;  %vm508_vm10 = vcmp.eq.s32.totalorder %v1067_v29, %v507_v55 }
  0x4c   : > { %v328_v58 = vadd.f32 %v326_v57, %v320_v54  ;;  %v512_v59 = vsel %vm509_vm7, %v510_v53, 0.0  ;;  %v327_v63 = vadd.f32 %v325_v62, %v319_v60  ;;  %v511_v1 = vsel %vm508_vm10, %v510_v53, 0.0 }
  0x4d   : > { %v514_v61 = vadd.f32 %v512_v59, %v506_v56  ;;  %v513_v2 = vadd.f32 %v511_v1, %v505_v0  ;;  %v398_v21 = vperm.slane %v307_v39, 1  ;;  %v583_v22 = vperm.slane %v496_v42, 1 }
  0x4e   : > { %368 = vmatpush.msra.mxu0 %v328_v58  ;;  %852 = vmatpush.msra.mxu2 %v328_v58  ;;  %vm402_vm12 = vcmp.eq.s32.totalorder %v1067_v29, %v401_v19  ;;  %vm587_vm13 = vcmp.eq.s32.totalorder %v1067_v29, %v586_v20  ;;  %v395_v23 = vperm.slane %v1075_v36, 1  ;;  %v580_v24 = vperm.slane %v1079_v38, 1 }
  0x4f   : > { %553 = vmatpush.msra.mxu1 %v514_v61  ;;  %854 = vmatpush.msra.mxu3 %v514_v61  ;;  %v404_v25 = vperm.slane %v1073_v35, 1  ;;  %v589_v26 = vperm.slane %v1077_v37, 1  ;;  %vm403_vm0 = vcmp.eq.s32.totalorder %v1071_v34, %v401_v19  ;;  %vm588_vm1 = vcmp.eq.s32.totalorder %v1071_v34, %v586_v20 }
  0x50   : > { %369 = vmatpush.msra.mxu0 %v327_v63  ;;  %853 = vmatpush.msra.mxu2 %v327_v63  ;;  %vm396_vm14 = vcmp.eq.s32.totalorder %v1067_v29, %v395_v23  ;;  %vm581_vm15 = vcmp.eq.s32.totalorder %v1067_v29, %v580_v24  ;;  %vm397_vm2 = vcmp.eq.s32.totalorder %v1071_v34, %v395_v23  ;;  %vm670_vm4 = vcmask 1041409  }
  0x51   : > { %554 = vmatpush.msra.mxu1 %v513_v2  ;;  %855 = vmatpush.msra.mxu3 %v513_v2  ;;  %v399_v27 = vsel %vm396_vm14, %v398_v21, 0.0  ;;  %v405_v28 = vsel %vm402_vm12, %v404_v25, 0.0  ;;  %v584_v30 = vsel %vm581_vm15, %v583_v22, 0.0  ;;  %v590_v31 = vsel %vm587_vm13, %v589_v26, 0.0 }
  0x52   : > { %821 = vmatmul.msk.f32.vlgmr.msra.gmra.mxu0 %vm329_vm11, %v279_v3  ;;  %825 = vmatmul.msk.f32.vlgmr.msra.gmra.mxu2 %vm329_vm11, %v283_v4  ;;  %v1170_v32 = vadd.f32 %v405_v28, %v399_v27  ;;  %v1172_v33 = vadd.f32 %v590_v31, %v584_v30  ;;  %vm582_vm3 = vcmp.eq.s32.totalorder %v1071_v34, %v580_v24  ;;  %v400_v35 = vsel %vm397_vm2, %v398_v21, 0.0 }
  0x53   : > { %840 = vmatmul.msk.f32.vlgmr.msra.gmra.mxu1 %vm329_vm11, %v829_v5  ;;  %844 = vmatmul.msk.f32.vlgmr.msra.gmra.mxu3 %vm329_vm11, %v833_v6  ;;  %v406_v36 = vsel %vm403_vm0, %v404_v25, 0.0  ;;  %v585_v37 = vsel %vm582_vm3, %v583_v22, 0.0  ;;  %v591_v29 = vsel %vm588_vm1, %v589_v26, 0.0  ;;  %vm672_vm5 = vcmask 1042434  }
  0x54   : > { %v1178_v38 = vadd.f32 %v406_v36, %v400_v35  ;;  %v1180_v39 = vadd.f32 %v591_v29, %v585_v37  ;;  %vm674_vm6 = vcmask 1043459  }
  0x5a   : > { %822 = vmatmul.msk.f32.gmra.mxu0 %vm329_vm11, %v280_v7  ;;  %826 = vmatmul.msk.f32.gmra.mxu2 %vm329_vm11, %v284_v8 }
  0x5b   : > { %841 = vmatmul.msk.f32.gmra.mxu1 %vm329_vm11, %v830_v9  ;;  %845 = vmatmul.msk.f32.gmra.mxu3 %vm329_vm11, %v834_v10 }
  0x62   : > { %823 = vmatmul.msk.f32.gmra.mxu0 %vm329_vm11, %v281_v11  ;;  %827 = vmatmul.msk.f32.gmra.mxu2 %vm329_vm11, %v285_v12 }
  0x63   : > { %842 = vmatmul.msk.f32.gmra.mxu1 %vm329_vm11, %v831_v13  ;;  %846 = vmatmul.msk.f32.gmra.mxu3 %vm329_vm11, %v835_v14 }
  0x6a   : > { %824 = vmatmul.msk.f32.gmra.mxu0 %vm329_vm11, %v282_v15  ;;  %828 = vmatmul.msk.f32.gmra.mxu2 %vm329_vm11, %v286_v16 }
  0x6b   : > { %843 = vmatmul.msk.f32.gmra.mxu1 %vm329_vm11, %v832_v17  ;;  %847 = vmatmul.msk.f32.gmra.mxu3 %vm329_vm11, %v836_v18 }
  0xcf   : > { %v371_v40 = vpop.f32.mrf.mxu0 }
  0xd0   : > { %v409_v41 = vmul.f32 %v1170_v32, %v371_v40  ;;  %v556_v42 = vpop.f32.mrf.mxu1 }
  0xd1   : > { %v594_v43 = vmul.f32 %v1172_v33, %v556_v42 }
  0xd2   : > { %v413_v44 = vrot.slane %v409_v41, 4 }
  0xd3   : > { %v598_v45 = vrot.slane %v594_v43, 4 }
  0xd4   : > { %v414_v46 = vadd.f32 %v413_v44, %v409_v41 }
  0xd5   : > { %v599_v47 = vadd.f32 %v598_v45, %v594_v43  ;;  %v383_v48 = vpop.f32.mrf.mxu2 }
  0xd6   : > { %v411_v34 = vmul.f32 %v1170_v32, %v383_v48  ;;  %v568_v49 = vpop.f32.mrf.mxu3  ;;  %v415_v52 = vrot.slane %v414_v46, 2 }
  0xd7   : > { %v596_v50 = vmul.f32 %v1172_v33, %v568_v49  ;;  %v374_v51 = vpop.f32.mrf.mxu0  ;;  %v600_v56 = vrot.slane %v599_v47, 2 }
  0xd8   : > { %v425_v53 = vrot.slane %v411_v34, 4  ;;  %v441_v54 = vmul.f32 %v1178_v38, %v374_v51  ;;  %v559_v55 = vpop.f32.mrf.mxu1  ;;  %v416_v63 = vadd.f32 %v415_v52, %v414_v46 }
  0xd9   : > { %v610_v57 = vrot.slane %v596_v50, 4  ;;  %v626_v58 = vmul.f32 %v1180_v39, %v559_v55  ;;  %v601_v1 = vadd.f32 %v600_v56, %v599_v47 }
  0xda   : > { %v426_v59 = vadd.f32 %v425_v53, %v411_v34  ;;  %v445_v60 = vrot.slane %v441_v54, 4  ;;  %v417_v12 = vrot.slane %v416_v63, 1 }
  0xdb   : > { %v611_v61 = vadd.f32 %v610_v57, %v596_v50  ;;  %v630_v62 = vrot.slane %v626_v58, 4  ;;  %v602_v17 = vrot.slane %v601_v1, 1 }
  0xdc   : > { %v446_v0 = vadd.f32 %v445_v60, %v441_v54  ;;  %v427_v4 = vrot.slane %v426_v59, 2  ;;  %v418_v28 = vadd.f32 %v417_v12, %v416_v63 }
  0xdd   : > { %v631_v2 = vadd.f32 %v630_v62, %v626_v58  ;;  %v386_v3 = vpop.f32.mrf.mxu2  ;;  %v612_v8 = vrot.slane %v611_v61, 2  ;;  %v603_v36 = vadd.f32 %v602_v17, %v601_v1 }
  0xde   : > { %v447_v5 = vrot.slane %v446_v0, 2  ;;  %v443_v6 = vmul.f32 %v1178_v38, %v386_v3  ;;  %v571_v7 = vpop.f32.mrf.mxu3  ;;  %v428_v21 = vadd.f32 %v427_v4, %v426_v59 }
  0xdf   : > { %v632_v9 = vrot.slane %v631_v2, 2  ;;  %v628_v10 = vmul.f32 %v1180_v39, %v571_v7  ;;  %v377_v11 = vpop.f32.mrf.mxu0  ;;  %v613_v25 = vadd.f32 %v612_v8, %v611_v61 }
  0xe0   : > { %v448_v13 = vadd.f32 %v447_v5, %v446_v0  ;;  %v457_v14 = vrot.slane %v443_v6, 4  ;;  %v410_v15 = vmul.f32 %v1170_v32, %v377_v11  ;;  %v562_v16 = vpop.f32.mrf.mxu1  ;;  %v429_v42 = vrot.slane %v428_v21, 1 }
  0xe1   : > { %v633_v18 = vadd.f32 %v632_v9, %v631_v2  ;;  %v642_v19 = vrot.slane %v628_v10, 4  ;;  %v595_v20 = vmul.f32 %v1172_v33, %v562_v16  ;;  %v614_v47 = vrot.slane %v613_v25, 1 }
  0xe2   : > { %v449_v22 = vrot.slane %v448_v13, 1  ;;  %v458_v23 = vadd.f32 %v457_v14, %v443_v6  ;;  %v419_v24 = vrot.slane %v410_v15, 4  ;;  %v430_v58 = vadd.f32 %v429_v42, %v428_v21 }
  0xe3   : > { %v634_v26 = vrot.slane %v633_v18, 1  ;;  %v643_v27 = vadd.f32 %v642_v19, %v628_v10  ;;  %v604_v35 = vrot.slane %v595_v20, 4  ;;  %v615_v62 = vadd.f32 %v614_v47, %v613_v25 }
  0xe4   : > { %v450_v30 = vadd.f32 %v449_v22, %v448_v13  ;;  %v459_v31 = vrot.slane %v458_v23, 2  ;;  %v420_v40 = vadd.f32 %v419_v24, %v410_v15 }
  0xe5   : > { %v635_v37 = vadd.f32 %v634_v26, %v633_v18  ;;  %v644_v29 = vrot.slane %v643_v27, 2  ;;  %v389_v41 = vpop.f32.mrf.mxu2  ;;  %v605_v52 = vadd.f32 %v604_v35, %v595_v20 }
  0xe6   : > { %v1192_v43 = vadd.f32 %v450_v30, %v418_v28  ;;  %v460_v44 = vadd.f32 %v459_v31, %v458_v23  ;;  %v412_v45 = vmul.f32 %v1170_v32, %v389_v41  ;;  %v574_v46 = vpop.f32.mrf.mxu3  ;;  %v421_v57 = vrot.slane %v420_v40, 2 }
  0xe7   : > { %v1195_v48 = vadd.f32 %v635_v37, %v603_v36  ;;  %v645_v34 = vadd.f32 %v644_v29, %v643_v27  ;;  %v597_v49 = vmul.f32 %v1172_v33, %v574_v46  ;;  %v380_v50 = vpop.f32.mrf.mxu0  ;;  %v606_v2 = vrot.slane %v605_v52, 2 }
  0xe8   : > { %v461_v51 = vrot.slane %v460_v44, 1  ;;  %v431_v53 = vrot.slane %v412_v45, 4  ;;  %v442_v54 = vmul.f32 %v1178_v38, %v380_v50  ;;  %v565_v33 = vpop.f32.mrf.mxu1  ;;  %v422_v5 = vadd.f32 %v421_v57, %v420_v40 }
  0xe9   : > { %v658_v55 = vmax.f32 %v1192_v43, %v1195_v48  ;;  %v1203_v56 = vadd.f32 %v1195_v48, %v1192_v43  ;;  %v646_v32 = vrot.slane %v645_v34, 1  ;;  %v616_v61 = vrot.slane %v597_v49, 4 }
  0xea   : > { %v462_v59 = vadd.f32 %v461_v51, %v460_v44  ;;  %v432_v60 = vadd.f32 %v431_v53, %v412_v45  ;;  %v451_v0 = vrot.slane %v442_v54, 4  ;;  %v627_v7 = vmul.f32 %v1180_v39, %v565_v33 }
  0xeb   : > { %v647_v63 = vadd.f32 %v646_v32, %v645_v34  ;;  %v617_v3 = vadd.f32 %v616_v61, %v597_v49  ;;  %v423_v19 = vrot.slane %v422_v5, 1  ;;  %v607_v20 = vadd.f32 %v606_v2, %v605_v52 }
  0xec   : > { %v1205_v1 = vadd.f32 %v462_v59, %v430_v58  ;;  %v452_v6 = vadd.f32 %v451_v0, %v442_v54  ;;  %v433_v9 = vrot.slane %v432_v60, 2  ;;  %v636_v15 = vrot.slane %v627_v7, 4 }
  0xed   : > { %v1207_v4 = vadd.f32 %v647_v63, %v615_v62  ;;  %v392_v8 = vpop.f32.mrf.mxu2  ;;  %v618_v16 = vrot.slane %v617_v3, 2  ;;  %v424_v31 = vadd.f32 %v423_v19, %v422_v5  ;;  %v608_v35 = vrot.slane %v607_v20, 1 }
  0xee   : > { %v444_v10 = vmul.f32 %v1178_v38, %v392_v8  ;;  %v577_v11 = vpop.f32.mrf.mxu3  ;;  %v453_v14 = vrot.slane %v452_v6, 2  ;;  %v637_v22 = vadd.f32 %v636_v15, %v627_v7  ;;  %v434_v38 = vadd.f32 %v433_v9, %v432_v60 }
  0xef   : > { %v660_v12 = vmax.f32 %v1205_v1, %v1207_v4  ;;  %v664_v13 = vadd.f32 %v1207_v4, %v1205_v1  ;;  %v629_v18 = vmul.f32 %v1180_v39, %v577_v11  ;;  %v619_v27 = vadd.f32 %v618_v16, %v617_v3 }
  0xf0   : > { %v463_v17 = vrot.slane %v444_v10, 4  ;;  %v454_v21 = vadd.f32 %v453_v14, %v452_v6  ;;  %v638_v26 = vrot.slane %v637_v22, 2  ;;  %v435_v29 = vrot.slane %v434_v38, 1 }
  0xf1   : > { %v648_v24 = vrot.slane %v629_v18, 4  ;;  %v620_v44 = vrot.slane %v619_v27, 1  ;;  %v609_v47 = vadd.f32 %v608_v35, %v607_v20  ;;  %v678_v60 = vmul.f32 0.5, %v1203_v56 }
  0xf2   : > { %v464_v23 = vadd.f32 %v463_v17, %v444_v10  ;;  %v455_v25 = vrot.slane %v454_v21, 1  ;;  %v639_v37 = vadd.f32 %v638_v26, %v637_v22  ;;  %v436_v49 = vadd.f32 %v435_v29, %v434_v38 }
  0xf3   : > { %v649_v30 = vadd.f32 %v648_v24, %v629_v18  ;;  %v621_v53 = vadd.f32 %v620_v44, %v619_v27  ;;  %v680_v62 = vmul.f32 0.5, %v664_v13 }
  0xf4   : > { %v465_v28 = vrot.slane %v464_v23, 2  ;;  %v456_v36 = vadd.f32 %v455_v25, %v454_v21  ;;  %v640_v42 = vrot.slane %v639_v37, 1 }
  0xf5   : > { %v650_v40 = vrot.slane %v649_v30, 2 }
  0xf6   : > { %v466_v39 = vadd.f32 %v465_v28, %v464_v23  ;;  %v470_v41 = vadd.f32 %v456_v36, %v424_v31  ;;  %v641_v34 = vadd.f32 %v640_v42, %v639_v37 }
  0xf7   : > { %v651_v46 = vadd.f32 %v650_v40, %v649_v30 }
  0xf8   : > { %v467_v45 = vrot.slane %v466_v39, 1  ;;  %v655_v52 = vadd.f32 %v641_v34, %v609_v47 }
  0xf9   : > { %v652_v51 = vrot.slane %v651_v46, 1 }
  0xfa   : > { %v468_v50 = vadd.f32 %v467_v45, %v466_v39  ;;  %v659_v57 = vmax.f32 %v470_v41, %v655_v52  ;;  %v663_v58 = vadd.f32 %v655_v52, %v470_v41 }
  0xfb   : > { %v653_v32 = vadd.f32 %v652_v51, %v651_v46 }
  0xfc   : > { %v472_v54 = vadd.f32 %v468_v50, %v436_v49  ;;  %v671_v61 = vsel %vm670_vm4, %v659_v57, %v658_v55  ;;  %v679_v33 = vmul.f32 0.5, %v663_v58 }
  0xfd   : > { %v657_v59 = vadd.f32 %v653_v32, %v621_v53  ;;  %v673_v1 = vsel %vm672_vm5, %v660_v12, %v671_v61 }
  0xfe   : > { %v686_v2 = vsel %vm670_vm4, %v679_v33, %v678_v60 }
  0xff   : > { %v661_v63 = vmax.f32 %v472_v54, %v657_v59  ;;  %v665_v0 = vadd.f32 %v657_v59, %v472_v54  ;;  %v687_v56 = vsel %vm672_vm5, %v680_v62, %v686_v2 }
 0x101   : > { %v675_v3 = vsel %vm674_vm6, %v661_v63, %v673_v1  ;;  %v681_v4 = vmul.f32 0.5, %v665_v0 }
 0x102   : > { %677 = vst [vmem:[%s277_s5] sm:$0xf] %v675_v3 }
 0x103   : > { %v688_v5 = vsel %vm674_vm6, %v681_v4, %v687_v56 }
 0x104   : > { %690 = vst [vmem:[%s277_s5 + $0x4] sm:$0xf] %v688_v5 }
 0x105 PF: > { %s13_s18 = sadd.s32 1, %s973_s18   ;;  %s1257_s12 = smov %s953_s13 }
 0x106   : > { %p10_p13 = scmp.ge.s32.totalorder %s13_s18, 6   ;;  %s1258_s13 = smov %s1047_s25 }
 0x107   : > { %s1259_s14 = smov %s965_s16  ;;  %s1260_s15 = smov %s969_s17 }
 0x108   : > { %s1261_s16 = smov %s1264_s19  ;;  %s1262_s17 = smov %s1268_s20 }
 0x109   :  { %12 = sbr.rel (!%p10_p13) target bundleno = 4 (0x4), region = 109 }

</bundles_post_ra>
